<compile_context>
chip_gen: v5e
topology: v5e:2x2
jax: 0.10.0
libtpu: 0.0.40
codegen_flags: <defaults>
</compile_context>

<pallas_src>
import functools

import jax
import jax.numpy as jnp
from jax.experimental import pallas as pl
from jax.experimental.pallas import tpu as pltpu

EPS = 1e-5


# --------------------------------------------------------------------------
# Fused kernel (one grid step == one batch element)
# --------------------------------------------------------------------------
def _layer_norm(x, gamma, beta):
    """LayerNorm over the last axis, in f32."""
    mu = x.mean(axis=-1, keepdims=True)
    var = ((x - mu) ** 2).mean(axis=-1, keepdims=True)
    return (x - mu) * jax.lax.rsqrt(var + EPS) * gamma + beta


def tinyllm_kernel(tok_ref, emb_u_ref, emb_v_ref,
                   wqkv_ref, bqkv_ref, wo_ref, bo_ref,
                   g1_ref, be1_ref, w1_ref, b1_ref,
                   w2_ref, b2_ref, g2_ref, be2_ref,
                   lm_w_ref, lm_b_ref, o_ref,
                   *, num_heads, num_layers):
    S = tok_ref.shape[1]                     # rows of this batch element
    V = emb_u_ref.shape[0]
    D = emb_v_ref.shape[1]
    H = num_heads
    dh = D // H

    # ---- embedding: one-hot matmul through the low-rank factorization ----
    # (kept as a matmul only because V == 128 == one lane-dense vreg; for a
    #  larger vocab this should become a scalar-prefetch row gather)
    tok = tok_ref[0]                                              # (S, 1) i32
    vocab_iota = jax.lax.broadcasted_iota(jnp.int32, (S, V), 1)
    one_hot = jnp.where(tok == vocab_iota, 1.0, 0.0).astype(jnp.bfloat16)
    # (S, R) intermediate stays f32 (exact row selection of emb_u).
    hr = jnp.dot(one_hot, emb_u_ref[...],
                 preferred_element_type=jnp.float32)              # (S, R) f32
    h = jnp.dot(hr, emb_v_ref[...].astype(jnp.float32),
                preferred_element_type=jnp.float32)               # (S, D) f32

    for l in range(num_layers):              # static unroll (L is small)
        x = h                                                     # (S, D) f32

        # fused QKV projection: one (S, D) @ (D, 3D) matmul.
        # NOTE: 1/sqrt(dh) is already folded into the Q columns of wqkv.
        qkv = jnp.dot(x.astype(jnp.bfloat16), wqkv_ref[l],
                      preferred_element_type=jnp.float32) + bqkv_ref[l]
        q = qkv[:, :D].astype(jnp.bfloat16).reshape(S, H, dh)
        k = qkv[:, D:2 * D].astype(jnp.bfloat16).reshape(S, H, dh)
        v = qkv[:, 2 * D:].astype(jnp.bfloat16).reshape(S, H, dh)

        # batched attention: head axis is the batch dim of the contraction.
        s = jnp.einsum('qhd,khd->hqk', q, k,
                       preferred_element_type=jnp.float32)        # (H, S, S)
        s = s - s.max(axis=-1, keepdims=True)
        p = jnp.exp(s)
        p = p * pl.reciprocal(p.sum(axis=-1, keepdims=True), approx=True)
        ctx = jnp.einsum('hqk,khd->qhd', p.astype(jnp.bfloat16), v,
                         preferred_element_type=jnp.float32
                         ).reshape(S, D)                          # (S, D) f32

        attn = jnp.dot(ctx.astype(jnp.bfloat16), wo_ref[l],
                       preferred_element_type=jnp.float32) + bo_ref[l]

        # residual + LayerNorm 1 (post-LN)
        h1 = _layer_norm(x + attn, g1_ref[l], be1_ref[l])

        # feed-forward (ReLU), residual + LayerNorm 2
        ff = jnp.maximum(
            jnp.dot(h1.astype(jnp.bfloat16), w1_ref[l],
                    preferred_element_type=jnp.float32) + b1_ref[l], 0.0)
        ff = jnp.dot(ff.astype(jnp.bfloat16), w2_ref[l],
                     preferred_element_type=jnp.float32) + b2_ref[l]
        h = _layer_norm(h1 + ff, g2_ref[l], be2_ref[l])

    # final Linear(embed_size, vocab_size) -> lane-dense (1, S, V=128) store
    logits = jnp.dot(h.astype(jnp.bfloat16), lm_w_ref[...],
                     preferred_element_type=jnp.float32) + lm_b_ref[...]
    o_ref[...] = logits.astype(o_ref.dtype)[None, :, :]


# --------------------------------------------------------------------------
# Wrapper
# --------------------------------------------------------------------------
def _full_spec(arr):
    """Untiled, grid-invariant full-array VMEM block (weights)."""
    nd = arr.ndim
    return pl.BlockSpec(arr.shape, lambda b, _nd=nd: (0,) * _nd)


def tinyllm_forward(params, x_tokens, encoder_output, num_heads):
    # TODO(synk): encoder_output is accepted but unused — the reference
    # TransformerEncoder takes only x and forward() is empty.
    del encoder_output
    B, S = x_tokens.shape
    N = B * S
    V, R = params["emb_u"].shape
    D = params["emb_v"].shape[1]
    F = params["w1"].shape[2]
    L = params["wqkv"].shape[0]
    H = num_heads

    tok = x_tokens.reshape(B, S, 1).astype(jnp.int32)
    kernel = functools.partial(tinyllm_kernel, num_heads=H, num_layers=L)

    weights = (params["emb_u"], params["emb_v"],
               params["wqkv"], params["bqkv"], params["wo"], params["bo"],
               params["g1"], params["be1"], params["w1"], params["b1"],
               params["w2"], params["b2"], params["g2"], params["be2"],
               params["lm_w"], params["lm_b"])

    # Advisory cost estimate so XLA schedules neighbouring ops sensibly.
    flops_per_row = (2 * V * R + 2 * R * D
                     + L * (2 * D * 3 * D       # QKV
                            + 4 * S * D          # QK^T + P·V
                            + 2 * D * D          # out proj
                            + 4 * D * F)         # FF
                     + 2 * D * V)                # lm head
    param_bytes = sum(int(w.size) * w.dtype.itemsize for w in weights)
    cost = pl.CostEstimate(
        flops=N * flops_per_row,
        transcendentals=N * L * (S * H + H + 2),
        bytes_accessed=param_bytes + N * 4 + N * V * 4)

    logits = pl.pallas_call(
        kernel,
        out_shape=jax.ShapeDtypeStruct((B, S, V), jnp.float32),
        grid=(B,),
        in_specs=[pl.BlockSpec((1, S, 1), lambda b: (b, 0, 0))]
                 + [_full_spec(w) for w in weights],
        out_specs=pl.BlockSpec((1, S, V), lambda b: (b, 0, 0)),
        compiler_params=pltpu.CompilerParams(
            dimension_semantics=("parallel",),    # shard batch across TCs (v7x)
            vmem_limit_bytes=32 * 1024 * 1024),
        cost_estimate=cost,
    )(tok, *weights)

    return logits


# --------------------------------------------------------------------------
# Parameter construction (deterministic, synthetic)
# --------------------------------------------------------------------------
def init_tinyllm_params(key, vocab_size, embed_size, ff_size, dec_layers,
                        embedding_rank, num_heads):
    D, F, V, R, L = embed_size, ff_size, vocab_size, embedding_rank, dec_layers
    dh = D // num_heads
    keys = jax.random.split(key, 7)
    s = 0.02
    bf16, f32 = jnp.bfloat16, jnp.float32

    def nrm_f32(k, shape):
        return jax.random.normal(k, shape, f32) * s

    # Fold the attention softmax scale 1/sqrt(dh) into the Q columns of the
    # fused QKV weight (and its bias slice) so the kernel never multiplies
    # the score matrix.
    q_scale = 1.0 / jnp.sqrt(jnp.float32(dh))
    wqkv = nrm_f32(keys[2], (L, D, 3 * D))
    wqkv = wqkv.at[:, :, :D].multiply(q_scale)
    bqkv = jnp.zeros((L, 1, 3 * D), f32)          # zero; Q-slice scale is a no-op

    return {
        # low-rank embedding (EmbeddingLayer with embedding_rank)
        "emb_u": nrm_f32(keys[0], (V, R)).astype(bf16),
        "emb_v": nrm_f32(keys[1], (R, D)).astype(bf16),
        # stacked (L, ...) decoder-layer weights; QKV fused into one matmul
        "wqkv": wqkv.astype(bf16),
        "bqkv": bqkv,
        "wo":   nrm_f32(keys[3], (L, D, D)).astype(bf16),
        "bo":   jnp.zeros((L, 1, D), f32),
        "g1":   jnp.ones((L, 1, D), f32),
        "be1":  jnp.zeros((L, 1, D), f32),
        "w1":   nrm_f32(keys[4], (L, D, F)).astype(bf16),
        "b1":   jnp.zeros((L, 1, F), f32),
        "w2":   nrm_f32(keys[5], (L, F, D)).astype(bf16),
        "b2":   jnp.zeros((L, 1, D), f32),
        "g2":   jnp.ones((L, 1, D), f32),
        "be2":  jnp.zeros((L, 1, D), f32),
        # final Linear(embed_size, vocab_size)
        "lm_w": nrm_f32(keys[6], (D, V)).astype(bf16),
        "lm_b": jnp.zeros((1, V), f32),
    }


# --------------------------------------------------------------------------
# Main
# --------------------------------------------------------------------------
if __name__ == "__main__":
    # small config consistent with the module's constructor
    vocab_size = 128
    embed_size = 32
    num_heads = 4
    ff_size = 64
    dec_layers = 2
    embedding_rank = 16
    batch, seq = 2, 8

    key = jax.random.PRNGKey(0)
    k_param, k_tok, k_enc = jax.random.split(key, 3)

    params = init_tinyllm_params(k_param, vocab_size, embed_size, ff_size,
                                 dec_layers, embedding_rank, num_heads)
    x_tokens = jax.random.randint(k_tok, (batch, seq), 0, vocab_size,
                                  dtype=jnp.int32)
    encoder_output = jax.random.normal(k_enc, (batch, seq, embed_size),
                                       jnp.float32)

    logits = tinyllm_forward(params, x_tokens, encoder_output, num_heads)
    jax.block_until_ready(logits)
    assert logits.shape == (batch, seq, vocab_size)
    assert bool(jnp.all(jnp.isfinite(logits)))
    print("KERNEL_OK")
</pallas_src>

<mosaic_0001>
module attributes {stable_mosaic.version = 11 : i64} {
  func.func @tinyllm_kernel(%arg0: i32, %arg1: memref<1x8x1xi32, #tpu.memory_space<vmem>>, %arg2: memref<128x16xbf16, #tpu.memory_space<vmem>>, %arg3: memref<16x32xbf16, #tpu.memory_space<vmem>>, %arg4: memref<2x32x96xbf16, #tpu.memory_space<vmem>>, %arg5: memref<2x1x96xf32, #tpu.memory_space<vmem>>, %arg6: memref<2x32x32xbf16, #tpu.memory_space<vmem>>, %arg7: memref<2x1x32xf32, #tpu.memory_space<vmem>>, %arg8: memref<2x1x32xf32, #tpu.memory_space<vmem>>, %arg9: memref<2x1x32xf32, #tpu.memory_space<vmem>>, %arg10: memref<2x32x64xbf16, #tpu.memory_space<vmem>>, %arg11: memref<2x1x64xf32, #tpu.memory_space<vmem>>, %arg12: memref<2x64x32xbf16, #tpu.memory_space<vmem>>, %arg13: memref<2x1x32xf32, #tpu.memory_space<vmem>>, %arg14: memref<2x1x32xf32, #tpu.memory_space<vmem>>, %arg15: memref<2x1x32xf32, #tpu.memory_space<vmem>>, %arg16: memref<32x128xbf16, #tpu.memory_space<vmem>>, %arg17: memref<1x128xf32, #tpu.memory_space<vmem>>, %arg18: memref<1x8x128xf32, #tpu.memory_space<vmem>>) attributes {dimension_semantics = [#tpu.dimension_semantics<parallel>], iteration_bounds = array<i64: 2>, scalar_prefetch = 0 : i64, scratch_operands = 0 : i64, tpu.core_type = #tpu.core_type<tc>, window_params = [{transform_indices = @transform_0, window_bounds = array<i64: 1, 8, 1>}, {pipeline_mode = #tpu.pipeline_mode<synchronous>, transform_indices = @transform_1, window_bounds = array<i64: 128, 16>}, {pipeline_mode = #tpu.pipeline_mode<synchronous>, transform_indices = @transform_2, window_bounds = array<i64: 16, 32>}, {pipeline_mode = #tpu.pipeline_mode<synchronous>, transform_indices = @transform_3, window_bounds = array<i64: 2, 32, 96>}, {pipeline_mode = #tpu.pipeline_mode<synchronous>, transform_indices = @transform_4, window_bounds = array<i64: 2, 1, 96>}, {pipeline_mode = #tpu.pipeline_mode<synchronous>, transform_indices = @transform_5, window_bounds = array<i64: 2, 32, 32>}, {pipeline_mode = #tpu.pipeline_mode<synchronous>, transform_indices = @transform_6, window_bounds = array<i64: 2, 1, 32>}, {pipeline_mode = #tpu.pipeline_mode<synchronous>, transform_indices = @transform_7, window_bounds = array<i64: 2, 1, 32>}, {pipeline_mode = #tpu.pipeline_mode<synchronous>, transform_indices = @transform_8, window_bounds = array<i64: 2, 1, 32>}, {pipeline_mode = #tpu.pipeline_mode<synchronous>, transform_indices = @transform_9, window_bounds = array<i64: 2, 32, 64>}, {pipeline_mode = #tpu.pipeline_mode<synchronous>, transform_indices = @transform_10, window_bounds = array<i64: 2, 1, 64>}, {pipeline_mode = #tpu.pipeline_mode<synchronous>, transform_indices = @transform_11, window_bounds = array<i64: 2, 64, 32>}, {pipeline_mode = #tpu.pipeline_mode<synchronous>, transform_indices = @transform_12, window_bounds = array<i64: 2, 1, 32>}, {pipeline_mode = #tpu.pipeline_mode<synchronous>, transform_indices = @transform_13, window_bounds = array<i64: 2, 1, 32>}, {pipeline_mode = #tpu.pipeline_mode<synchronous>, transform_indices = @transform_14, window_bounds = array<i64: 2, 1, 32>}, {pipeline_mode = #tpu.pipeline_mode<synchronous>, transform_indices = @transform_15, window_bounds = array<i64: 32, 128>}, {pipeline_mode = #tpu.pipeline_mode<synchronous>, transform_indices = @transform_16, window_bounds = array<i64: 1, 128>}, {transform_indices = @transform_17, window_bounds = array<i64: 1, 8, 128>}]} {
    %c0 = arith.constant 0 : index
    %c0_0 = arith.constant 0 : index
    %c0_1 = arith.constant 0 : index
    %0 = vector.load %arg1[%c0, %c0_0, %c0_1] : memref<1x8x1xi32, #tpu.memory_space<vmem>>, vector<1x8x1xi32>
    %1 = vector.shape_cast %0 : vector<1x8x1xi32> to vector<8x1xi32>
    %2 = tpu.iota {dimensions = array<i32: 1>} : vector<8x128xi32>
    %3 = vector.broadcast %1 : vector<8x1xi32> to vector<8x128xi32>
    %4 = arith.cmpi eq, %3, %2 : vector<8x128xi32>
    %cst = arith.constant 1.000000e+00 : f32
    %cst_2 = arith.constant 0.000000e+00 : f32
    %5 = vector.broadcast %cst : f32 to vector<8x128xf32>
    %6 = vector.broadcast %cst_2 : f32 to vector<8x128xf32>
    %7 = arith.select %4, %5, %6 : vector<8x128xi1>, vector<8x128xf32>
    %8 = arith.truncf %7 : vector<8x128xf32> to vector<8x128xbf16>
    %c0_3 = arith.constant 0 : index
    %c0_4 = arith.constant 0 : index
    %9 = vector.load %arg2[%c0_3, %c0_4] : memref<128x16xbf16, #tpu.memory_space<vmem>>, vector<128x16xbf16>
    %cst_5 = arith.constant dense<0.000000e+00> : vector<8x16xf32>
    %10 = tpu.matmul %8, %9, %cst_5 {dimension_numbers = #tpu.dot_dimension_numbers<[1], [0], [0], [1], [0, 0, 1, 1], [], []>} : vector<8x128xbf16>, vector<128x16xbf16>, vector<8x16xf32> -> vector<8x16xf32>
    %c0_6 = arith.constant 0 : index
    %c0_7 = arith.constant 0 : index
    %11 = vector.load %arg3[%c0_6, %c0_7] : memref<16x32xbf16, #tpu.memory_space<vmem>>, vector<16x32xbf16>
    %12 = arith.extf %11 : vector<16x32xbf16> to vector<16x32xf32>
    %cst_8 = arith.constant dense<0.000000e+00> : vector<8x32xf32>
    %13 = tpu.matmul %10, %12, %cst_8 {dimension_numbers = #tpu.dot_dimension_numbers<[1], [0], [0], [1], [0, 0, 1, 1], [], []>} : vector<8x16xf32>, vector<16x32xf32>, vector<8x32xf32> -> vector<8x32xf32>
    %14 = arith.truncf %13 : vector<8x32xf32> to vector<8x32xbf16>
    %c0_9 = arith.constant 0 : index
    %c0_10 = arith.constant 0 : index
    %c0_11 = arith.constant 0 : index
    %15 = vector.load %arg4[%c0_9, %c0_10, %c0_11] : memref<2x32x96xbf16, #tpu.memory_space<vmem>>, vector<1x32x96xbf16>
    %16 = vector.shape_cast %15 : vector<1x32x96xbf16> to vector<32x96xbf16>
    %cst_12 = arith.constant dense<0.000000e+00> : vector<8x96xf32>
    %17 = tpu.matmul %14, %16, %cst_12 {dimension_numbers = #tpu.dot_dimension_numbers<[1], [0], [0], [1], [0, 0, 1, 1], [], []>} : vector<8x32xbf16>, vector<32x96xbf16>, vector<8x96xf32> -> vector<8x96xf32>
    %c0_13 = arith.constant 0 : index
    %c0_14 = arith.constant 0 : index
    %c0_15 = arith.constant 0 : index
    %18 = vector.load %arg5[%c0_13, %c0_14, %c0_15] : memref<2x1x96xf32, #tpu.memory_space<vmem>>, vector<1x1x96xf32>
    %19 = vector.shape_cast %18 : vector<1x1x96xf32> to vector<1x96xf32>
    %20 = vector.broadcast %19 : vector<1x96xf32> to vector<8x96xf32>
    %21 = arith.addf %17, %20 : vector<8x96xf32>
    %22 = vector.extract_strided_slice %21 {offsets = [0, 0], sizes = [8, 32], strides = [1, 1]} : vector<8x96xf32> to vector<8x32xf32>
    %23 = arith.truncf %22 : vector<8x32xf32> to vector<8x32xbf16>
    %24 = vector.shape_cast %23 : vector<8x32xbf16> to vector<8x4x8xbf16>
    %25 = vector.extract_strided_slice %21 {offsets = [0, 32], sizes = [8, 32], strides = [1, 1]} : vector<8x96xf32> to vector<8x32xf32>
    %26 = arith.truncf %25 : vector<8x32xf32> to vector<8x32xbf16>
    %27 = vector.shape_cast %26 : vector<8x32xbf16> to vector<8x4x8xbf16>
    %28 = vector.extract_strided_slice %21 {offsets = [0, 64], sizes = [8, 32], strides = [1, 1]} : vector<8x96xf32> to vector<8x32xf32>
    %29 = arith.truncf %28 : vector<8x32xf32> to vector<8x32xbf16>
    %30 = vector.shape_cast %29 : vector<8x32xbf16> to vector<8x4x8xbf16>
    "tpu.trace_start"() <{level = 10 : i32, message = "qhd,khd->hqk"}> : () -> ()
    %cst_16 = arith.constant dense<0.000000e+00> : vector<4x8x8xf32>
    %31 = tpu.matmul %24, %27, %cst_16 {dimension_numbers = #tpu.dot_dimension_numbers<[2], [2], [0], [0], [0, 1, 0, 0, 1, 0], [1], [1]>} : vector<8x4x8xbf16>, vector<8x4x8xbf16>, vector<4x8x8xf32> -> vector<4x8x8xf32>
    "tpu.trace_stop"() : () -> ()
    %cst_17 = arith.constant dense<0xFF800000> : vector<4x8xf32>
    %32 = vector.multi_reduction <maximumf>, %31, %cst_17 [2] : vector<4x8x8xf32> to vector<4x8xf32>
    %33 = vector.shape_cast %32 : vector<4x8xf32> to vector<4x8x1xf32>
    %34 = vector.broadcast %33 : vector<4x8x1xf32> to vector<4x8x8xf32>
    %35 = arith.subf %31, %34 : vector<4x8x8xf32>
    %36 = math.exp %35 : vector<4x8x8xf32>
    %cst_18 = arith.constant dense<0.000000e+00> : vector<4x8xf32>
    %37 = vector.multi_reduction <add>, %36, %cst_18 [2] : vector<4x8x8xf32> to vector<4x8xf32>
    %38 = vector.shape_cast %37 : vector<4x8xf32> to vector<4x8x1xf32>
    %39 = tpu.reciprocal %38 {approx = true} : vector<4x8x1xf32> -> vector<4x8x1xf32>
    %40 = vector.broadcast %39 : vector<4x8x1xf32> to vector<4x8x8xf32>
    %41 = arith.mulf %36, %40 : vector<4x8x8xf32>
    %42 = arith.truncf %41 : vector<4x8x8xf32> to vector<4x8x8xbf16>
    "tpu.trace_start"() <{level = 10 : i32, message = "hqk,khd->qhd"}> : () -> ()
    %cst_19 = arith.constant dense<0.000000e+00> : vector<4x8x8xf32>
    %43 = tpu.matmul %30, %42, %cst_19 {dimension_numbers = #tpu.dot_dimension_numbers<[0], [2], [2], [1], [0, 1, 0, 2, 1, 1], [1], [0]>} : vector<8x4x8xbf16>, vector<4x8x8xbf16>, vector<4x8x8xf32> -> vector<4x8x8xf32>
    %44 = tpu.transpose %43, [2, 0, 1] : vector<4x8x8xf32> -> vector<8x4x8xf32>
    "tpu.trace_stop"() : () -> ()
    %45 = vector.shape_cast %44 : vector<8x4x8xf32> to vector<8x32xf32>
    %46 = arith.truncf %45 : vector<8x32xf32> to vector<8x32xbf16>
    %c0_20 = arith.constant 0 : index
    %c0_21 = arith.constant 0 : index
    %c0_22 = arith.constant 0 : index
    %47 = vector.load %arg6[%c0_20, %c0_21, %c0_22] : memref<2x32x32xbf16, #tpu.memory_space<vmem>>, vector<1x32x32xbf16>
    %48 = vector.shape_cast %47 : vector<1x32x32xbf16> to vector<32x32xbf16>
    %cst_23 = arith.constant dense<0.000000e+00> : vector<8x32xf32>
    %49 = tpu.matmul %46, %48, %cst_23 {dimension_numbers = #tpu.dot_dimension_numbers<[1], [0], [0], [1], [0, 0, 1, 1], [], []>} : vector<8x32xbf16>, vector<32x32xbf16>, vector<8x32xf32> -> vector<8x32xf32>
    %c0_24 = arith.constant 0 : index
    %c0_25 = arith.constant 0 : index
    %c0_26 = arith.constant 0 : index
    %50 = vector.load %arg7[%c0_24, %c0_25, %c0_26] : memref<2x1x32xf32, #tpu.memory_space<vmem>>, vector<1x1x32xf32>
    %51 = vector.shape_cast %50 : vector<1x1x32xf32> to vector<1x32xf32>
    %52 = vector.broadcast %51 : vector<1x32xf32> to vector<8x32xf32>
    %53 = arith.addf %49, %52 : vector<8x32xf32>
    %54 = arith.addf %13, %53 : vector<8x32xf32>
    %c0_27 = arith.constant 0 : index
    %c0_28 = arith.constant 0 : index
    %c0_29 = arith.constant 0 : index
    %55 = vector.load %arg8[%c0_27, %c0_28, %c0_29] : memref<2x1x32xf32, #tpu.memory_space<vmem>>, vector<1x1x32xf32>
    %56 = vector.shape_cast %55 : vector<1x1x32xf32> to vector<1x32xf32>
    %c0_30 = arith.constant 0 : index
    %c0_31 = arith.constant 0 : index
    %c0_32 = arith.constant 0 : index
    %57 = vector.load %arg9[%c0_30, %c0_31, %c0_32] : memref<2x1x32xf32, #tpu.memory_space<vmem>>, vector<1x1x32xf32>
    %58 = vector.shape_cast %57 : vector<1x1x32xf32> to vector<1x32xf32>
    %cst_33 = arith.constant dense<0.000000e+00> : vector<8xf32>
    %59 = vector.multi_reduction <add>, %54, %cst_33 [1] : vector<8x32xf32> to vector<8xf32>
    %60 = vector.shape_cast %59 : vector<8xf32> to vector<8x1xf32>
    %cst_34 = arith.constant 3.200000e+01 : f32
    %61 = vector.broadcast %cst_34 : f32 to vector<8x1xf32>
    %62 = arith.divf %60, %61 : vector<8x1xf32>
    %63 = vector.broadcast %62 : vector<8x1xf32> to vector<8x32xf32>
    %64 = arith.subf %54, %63 : vector<8x32xf32>
    %65 = arith.mulf %64, %64 : vector<8x32xf32>
    %cst_35 = arith.constant dense<0.000000e+00> : vector<8xf32>
    %66 = vector.multi_reduction <add>, %65, %cst_35 [1] : vector<8x32xf32> to vector<8xf32>
    %67 = vector.shape_cast %66 : vector<8xf32> to vector<8x1xf32>
    %cst_36 = arith.constant 3.200000e+01 : f32
    %68 = vector.broadcast %cst_36 : f32 to vector<8x1xf32>
    %69 = arith.divf %67, %68 : vector<8x1xf32>
    %70 = vector.broadcast %62 : vector<8x1xf32> to vector<8x32xf32>
    %71 = arith.subf %54, %70 : vector<8x32xf32>
    %cst_37 = arith.constant 9.99999974E-6 : f32
    %72 = vector.broadcast %cst_37 : f32 to vector<8x1xf32>
    %73 = arith.addf %69, %72 : vector<8x1xf32>
    %74 = math.rsqrt %73 : vector<8x1xf32>
    %75 = vector.broadcast %74 : vector<8x1xf32> to vector<8x32xf32>
    %76 = arith.mulf %71, %75 : vector<8x32xf32>
    %77 = vector.broadcast %56 : vector<1x32xf32> to vector<8x32xf32>
    %78 = arith.mulf %76, %77 : vector<8x32xf32>
    %79 = vector.broadcast %58 : vector<1x32xf32> to vector<8x32xf32>
    %80 = arith.addf %78, %79 : vector<8x32xf32>
    %81 = arith.truncf %80 : vector<8x32xf32> to vector<8x32xbf16>
    %c0_38 = arith.constant 0 : index
    %c0_39 = arith.constant 0 : index
    %c0_40 = arith.constant 0 : index
    %82 = vector.load %arg10[%c0_38, %c0_39, %c0_40] : memref<2x32x64xbf16, #tpu.memory_space<vmem>>, vector<1x32x64xbf16>
    %83 = vector.shape_cast %82 : vector<1x32x64xbf16> to vector<32x64xbf16>
    %cst_41 = arith.constant dense<0.000000e+00> : vector<8x64xf32>
    %84 = tpu.matmul %81, %83, %cst_41 {dimension_numbers = #tpu.dot_dimension_numbers<[1], [0], [0], [1], [0, 0, 1, 1], [], []>} : vector<8x32xbf16>, vector<32x64xbf16>, vector<8x64xf32> -> vector<8x64xf32>
    %c0_42 = arith.constant 0 : index
    %c0_43 = arith.constant 0 : index
    %c0_44 = arith.constant 0 : index
    %85 = vector.load %arg11[%c0_42, %c0_43, %c0_44] : memref<2x1x64xf32, #tpu.memory_space<vmem>>, vector<1x1x64xf32>
    %86 = vector.shape_cast %85 : vector<1x1x64xf32> to vector<1x64xf32>
    %87 = vector.broadcast %86 : vector<1x64xf32> to vector<8x64xf32>
    %88 = arith.addf %84, %87 : vector<8x64xf32>
    %cst_45 = arith.constant 0.000000e+00 : f32
    %89 = vector.broadcast %cst_45 : f32 to vector<8x64xf32>
    %90 = arith.maximumf %88, %89 : vector<8x64xf32>
    %91 = arith.truncf %90 : vector<8x64xf32> to vector<8x64xbf16>
    %c0_46 = arith.constant 0 : index
    %c0_47 = arith.constant 0 : index
    %c0_48 = arith.constant 0 : index
    %92 = vector.load %arg12[%c0_46, %c0_47, %c0_48] : memref<2x64x32xbf16, #tpu.memory_space<vmem>>, vector<1x64x32xbf16>
    %93 = vector.shape_cast %92 : vector<1x64x32xbf16> to vector<64x32xbf16>
    %cst_49 = arith.constant dense<0.000000e+00> : vector<8x32xf32>
    %94 = tpu.matmul %91, %93, %cst_49 {dimension_numbers = #tpu.dot_dimension_numbers<[1], [0], [0], [1], [0, 0, 1, 1], [], []>} : vector<8x64xbf16>, vector<64x32xbf16>, vector<8x32xf32> -> vector<8x32xf32>
    %c0_50 = arith.constant 0 : index
    %c0_51 = arith.constant 0 : index
    %c0_52 = arith.constant 0 : index
    %95 = vector.load %arg13[%c0_50, %c0_51, %c0_52] : memref<2x1x32xf32, #tpu.memory_space<vmem>>, vector<1x1x32xf32>
    %96 = vector.shape_cast %95 : vector<1x1x32xf32> to vector<1x32xf32>
    %97 = vector.broadcast %96 : vector<1x32xf32> to vector<8x32xf32>
    %98 = arith.addf %94, %97 : vector<8x32xf32>
    %99 = arith.addf %80, %98 : vector<8x32xf32>
    %c0_53 = arith.constant 0 : index
    %c0_54 = arith.constant 0 : index
    %c0_55 = arith.constant 0 : index
    %100 = vector.load %arg14[%c0_53, %c0_54, %c0_55] : memref<2x1x32xf32, #tpu.memory_space<vmem>>, vector<1x1x32xf32>
    %101 = vector.shape_cast %100 : vector<1x1x32xf32> to vector<1x32xf32>
    %c0_56 = arith.constant 0 : index
    %c0_57 = arith.constant 0 : index
    %c0_58 = arith.constant 0 : index
    %102 = vector.load %arg15[%c0_56, %c0_57, %c0_58] : memref<2x1x32xf32, #tpu.memory_space<vmem>>, vector<1x1x32xf32>
    %103 = vector.shape_cast %102 : vector<1x1x32xf32> to vector<1x32xf32>
    %cst_59 = arith.constant dense<0.000000e+00> : vector<8xf32>
    %104 = vector.multi_reduction <add>, %99, %cst_59 [1] : vector<8x32xf32> to vector<8xf32>
    %105 = vector.shape_cast %104 : vector<8xf32> to vector<8x1xf32>
    %cst_60 = arith.constant 3.200000e+01 : f32
    %106 = vector.broadcast %cst_60 : f32 to vector<8x1xf32>
    %107 = arith.divf %105, %106 : vector<8x1xf32>
    %108 = vector.broadcast %107 : vector<8x1xf32> to vector<8x32xf32>
    %109 = arith.subf %99, %108 : vector<8x32xf32>
    %110 = arith.mulf %109, %109 : vector<8x32xf32>
    %cst_61 = arith.constant dense<0.000000e+00> : vector<8xf32>
    %111 = vector.multi_reduction <add>, %110, %cst_61 [1] : vector<8x32xf32> to vector<8xf32>
    %112 = vector.shape_cast %111 : vector<8xf32> to vector<8x1xf32>
    %cst_62 = arith.constant 3.200000e+01 : f32
    %113 = vector.broadcast %cst_62 : f32 to vector<8x1xf32>
    %114 = arith.divf %112, %113 : vector<8x1xf32>
    %115 = vector.broadcast %107 : vector<8x1xf32> to vector<8x32xf32>
    %116 = arith.subf %99, %115 : vector<8x32xf32>
    %cst_63 = arith.constant 9.99999974E-6 : f32
    %117 = vector.broadcast %cst_63 : f32 to vector<8x1xf32>
    %118 = arith.addf %114, %117 : vector<8x1xf32>
    %119 = math.rsqrt %118 : vector<8x1xf32>
    %120 = vector.broadcast %119 : vector<8x1xf32> to vector<8x32xf32>
    %121 = arith.mulf %116, %120 : vector<8x32xf32>
    %122 = vector.broadcast %101 : vector<1x32xf32> to vector<8x32xf32>
    %123 = arith.mulf %121, %122 : vector<8x32xf32>
    %124 = vector.broadcast %103 : vector<1x32xf32> to vector<8x32xf32>
    %125 = arith.addf %123, %124 : vector<8x32xf32>
    %126 = arith.truncf %125 : vector<8x32xf32> to vector<8x32xbf16>
    %c1 = arith.constant 1 : index
    %c0_64 = arith.constant 0 : index
    %c0_65 = arith.constant 0 : index
    %127 = vector.load %arg4[%c1, %c0_64, %c0_65] : memref<2x32x96xbf16, #tpu.memory_space<vmem>>, vector<1x32x96xbf16>
    %128 = vector.shape_cast %127 : vector<1x32x96xbf16> to vector<32x96xbf16>
    %cst_66 = arith.constant dense<0.000000e+00> : vector<8x96xf32>
    %129 = tpu.matmul %126, %128, %cst_66 {dimension_numbers = #tpu.dot_dimension_numbers<[1], [0], [0], [1], [0, 0, 1, 1], [], []>} : vector<8x32xbf16>, vector<32x96xbf16>, vector<8x96xf32> -> vector<8x96xf32>
    %c1_67 = arith.constant 1 : index
    %c0_68 = arith.constant 0 : index
    %c0_69 = arith.constant 0 : index
    %130 = vector.load %arg5[%c1_67, %c0_68, %c0_69] : memref<2x1x96xf32, #tpu.memory_space<vmem>>, vector<1x1x96xf32>
    %131 = vector.shape_cast %130 : vector<1x1x96xf32> to vector<1x96xf32>
    %132 = vector.broadcast %131 : vector<1x96xf32> to vector<8x96xf32>
    %133 = arith.addf %129, %132 : vector<8x96xf32>
    %134 = vector.extract_strided_slice %133 {offsets = [0, 0], sizes = [8, 32], strides = [1, 1]} : vector<8x96xf32> to vector<8x32xf32>
    %135 = arith.truncf %134 : vector<8x32xf32> to vector<8x32xbf16>
    %136 = vector.shape_cast %135 : vector<8x32xbf16> to vector<8x4x8xbf16>
    %137 = vector.extract_strided_slice %133 {offsets = [0, 32], sizes = [8, 32], strides = [1, 1]} : vector<8x96xf32> to vector<8x32xf32>
    %138 = arith.truncf %137 : vector<8x32xf32> to vector<8x32xbf16>
    %139 = vector.shape_cast %138 : vector<8x32xbf16> to vector<8x4x8xbf16>
    %140 = vector.extract_strided_slice %133 {offsets = [0, 64], sizes = [8, 32], strides = [1, 1]} : vector<8x96xf32> to vector<8x32xf32>
    %141 = arith.truncf %140 : vector<8x32xf32> to vector<8x32xbf16>
    %142 = vector.shape_cast %141 : vector<8x32xbf16> to vector<8x4x8xbf16>
    "tpu.trace_start"() <{level = 10 : i32, message = "qhd,khd->hqk"}> : () -> ()
    %cst_70 = arith.constant dense<0.000000e+00> : vector<4x8x8xf32>
    %143 = tpu.matmul %136, %139, %cst_70 {dimension_numbers = #tpu.dot_dimension_numbers<[2], [2], [0], [0], [0, 1, 0, 0, 1, 0], [1], [1]>} : vector<8x4x8xbf16>, vector<8x4x8xbf16>, vector<4x8x8xf32> -> vector<4x8x8xf32>
    "tpu.trace_stop"() : () -> ()
    %cst_71 = arith.constant dense<0xFF800000> : vector<4x8xf32>
    %144 = vector.multi_reduction <maximumf>, %143, %cst_71 [2] : vector<4x8x8xf32> to vector<4x8xf32>
    %145 = vector.shape_cast %144 : vector<4x8xf32> to vector<4x8x1xf32>
    %146 = vector.broadcast %145 : vector<4x8x1xf32> to vector<4x8x8xf32>
    %147 = arith.subf %143, %146 : vector<4x8x8xf32>
    %148 = math.exp %147 : vector<4x8x8xf32>
    %cst_72 = arith.constant dense<0.000000e+00> : vector<4x8xf32>
    %149 = vector.multi_reduction <add>, %148, %cst_72 [2] : vector<4x8x8xf32> to vector<4x8xf32>
    %150 = vector.shape_cast %149 : vector<4x8xf32> to vector<4x8x1xf32>
    %151 = tpu.reciprocal %150 {approx = true} : vector<4x8x1xf32> -> vector<4x8x1xf32>
    %152 = vector.broadcast %151 : vector<4x8x1xf32> to vector<4x8x8xf32>
    %153 = arith.mulf %148, %152 : vector<4x8x8xf32>
    %154 = arith.truncf %153 : vector<4x8x8xf32> to vector<4x8x8xbf16>
    "tpu.trace_start"() <{level = 10 : i32, message = "hqk,khd->qhd"}> : () -> ()
    %cst_73 = arith.constant dense<0.000000e+00> : vector<4x8x8xf32>
    %155 = tpu.matmul %142, %154, %cst_73 {dimension_numbers = #tpu.dot_dimension_numbers<[0], [2], [2], [1], [0, 1, 0, 2, 1, 1], [1], [0]>} : vector<8x4x8xbf16>, vector<4x8x8xbf16>, vector<4x8x8xf32> -> vector<4x8x8xf32>
    %156 = tpu.transpose %155, [2, 0, 1] : vector<4x8x8xf32> -> vector<8x4x8xf32>
    "tpu.trace_stop"() : () -> ()
    %157 = vector.shape_cast %156 : vector<8x4x8xf32> to vector<8x32xf32>
    %158 = arith.truncf %157 : vector<8x32xf32> to vector<8x32xbf16>
    %c1_74 = arith.constant 1 : index
    %c0_75 = arith.constant 0 : index
    %c0_76 = arith.constant 0 : index
    %159 = vector.load %arg6[%c1_74, %c0_75, %c0_76] : memref<2x32x32xbf16, #tpu.memory_space<vmem>>, vector<1x32x32xbf16>
    %160 = vector.shape_cast %159 : vector<1x32x32xbf16> to vector<32x32xbf16>
    %cst_77 = arith.constant dense<0.000000e+00> : vector<8x32xf32>
    %161 = tpu.matmul %158, %160, %cst_77 {dimension_numbers = #tpu.dot_dimension_numbers<[1], [0], [0], [1], [0, 0, 1, 1], [], []>} : vector<8x32xbf16>, vector<32x32xbf16>, vector<8x32xf32> -> vector<8x32xf32>
    %c1_78 = arith.constant 1 : index
    %c0_79 = arith.constant 0 : index
    %c0_80 = arith.constant 0 : index
    %162 = vector.load %arg7[%c1_78, %c0_79, %c0_80] : memref<2x1x32xf32, #tpu.memory_space<vmem>>, vector<1x1x32xf32>
    %163 = vector.shape_cast %162 : vector<1x1x32xf32> to vector<1x32xf32>
    %164 = vector.broadcast %163 : vector<1x32xf32> to vector<8x32xf32>
    %165 = arith.addf %161, %164 : vector<8x32xf32>
    %166 = arith.addf %125, %165 : vector<8x32xf32>
    %c1_81 = arith.constant 1 : index
    %c0_82 = arith.constant 0 : index
    %c0_83 = arith.constant 0 : index
    %167 = vector.load %arg8[%c1_81, %c0_82, %c0_83] : memref<2x1x32xf32, #tpu.memory_space<vmem>>, vector<1x1x32xf32>
    %168 = vector.shape_cast %167 : vector<1x1x32xf32> to vector<1x32xf32>
    %c1_84 = arith.constant 1 : index
    %c0_85 = arith.constant 0 : index
    %c0_86 = arith.constant 0 : index
    %169 = vector.load %arg9[%c1_84, %c0_85, %c0_86] : memref<2x1x32xf32, #tpu.memory_space<vmem>>, vector<1x1x32xf32>
    %170 = vector.shape_cast %169 : vector<1x1x32xf32> to vector<1x32xf32>
    %cst_87 = arith.constant dense<0.000000e+00> : vector<8xf32>
    %171 = vector.multi_reduction <add>, %166, %cst_87 [1] : vector<8x32xf32> to vector<8xf32>
    %172 = vector.shape_cast %171 : vector<8xf32> to vector<8x1xf32>
    %cst_88 = arith.constant 3.200000e+01 : f32
    %173 = vector.broadcast %cst_88 : f32 to vector<8x1xf32>
    %174 = arith.divf %172, %173 : vector<8x1xf32>
    %175 = vector.broadcast %174 : vector<8x1xf32> to vector<8x32xf32>
    %176 = arith.subf %166, %175 : vector<8x32xf32>
    %177 = arith.mulf %176, %176 : vector<8x32xf32>
    %cst_89 = arith.constant dense<0.000000e+00> : vector<8xf32>
    %178 = vector.multi_reduction <add>, %177, %cst_89 [1] : vector<8x32xf32> to vector<8xf32>
    %179 = vector.shape_cast %178 : vector<8xf32> to vector<8x1xf32>
    %cst_90 = arith.constant 3.200000e+01 : f32
    %180 = vector.broadcast %cst_90 : f32 to vector<8x1xf32>
    %181 = arith.divf %179, %180 : vector<8x1xf32>
    %182 = vector.broadcast %174 : vector<8x1xf32> to vector<8x32xf32>
    %183 = arith.subf %166, %182 : vector<8x32xf32>
    %cst_91 = arith.constant 9.99999974E-6 : f32
    %184 = vector.broadcast %cst_91 : f32 to vector<8x1xf32>
    %185 = arith.addf %181, %184 : vector<8x1xf32>
    %186 = math.rsqrt %185 : vector<8x1xf32>
    %187 = vector.broadcast %186 : vector<8x1xf32> to vector<8x32xf32>
    %188 = arith.mulf %183, %187 : vector<8x32xf32>
    %189 = vector.broadcast %168 : vector<1x32xf32> to vector<8x32xf32>
    %190 = arith.mulf %188, %189 : vector<8x32xf32>
    %191 = vector.broadcast %170 : vector<1x32xf32> to vector<8x32xf32>
    %192 = arith.addf %190, %191 : vector<8x32xf32>
    %193 = arith.truncf %192 : vector<8x32xf32> to vector<8x32xbf16>
    %c1_92 = arith.constant 1 : index
    %c0_93 = arith.constant 0 : index
    %c0_94 = arith.constant 0 : index
    %194 = vector.load %arg10[%c1_92, %c0_93, %c0_94] : memref<2x32x64xbf16, #tpu.memory_space<vmem>>, vector<1x32x64xbf16>
    %195 = vector.shape_cast %194 : vector<1x32x64xbf16> to vector<32x64xbf16>
    %cst_95 = arith.constant dense<0.000000e+00> : vector<8x64xf32>
    %196 = tpu.matmul %193, %195, %cst_95 {dimension_numbers = #tpu.dot_dimension_numbers<[1], [0], [0], [1], [0, 0, 1, 1], [], []>} : vector<8x32xbf16>, vector<32x64xbf16>, vector<8x64xf32> -> vector<8x64xf32>
    %c1_96 = arith.constant 1 : index
    %c0_97 = arith.constant 0 : index
    %c0_98 = arith.constant 0 : index
    %197 = vector.load %arg11[%c1_96, %c0_97, %c0_98] : memref<2x1x64xf32, #tpu.memory_space<vmem>>, vector<1x1x64xf32>
    %198 = vector.shape_cast %197 : vector<1x1x64xf32> to vector<1x64xf32>
    %199 = vector.broadcast %198 : vector<1x64xf32> to vector<8x64xf32>
    %200 = arith.addf %196, %199 : vector<8x64xf32>
    %cst_99 = arith.constant 0.000000e+00 : f32
    %201 = vector.broadcast %cst_99 : f32 to vector<8x64xf32>
    %202 = arith.maximumf %200, %201 : vector<8x64xf32>
    %203 = arith.truncf %202 : vector<8x64xf32> to vector<8x64xbf16>
    %c1_100 = arith.constant 1 : index
    %c0_101 = arith.constant 0 : index
    %c0_102 = arith.constant 0 : index
    %204 = vector.load %arg12[%c1_100, %c0_101, %c0_102] : memref<2x64x32xbf16, #tpu.memory_space<vmem>>, vector<1x64x32xbf16>
    %205 = vector.shape_cast %204 : vector<1x64x32xbf16> to vector<64x32xbf16>
    %cst_103 = arith.constant dense<0.000000e+00> : vector<8x32xf32>
    %206 = tpu.matmul %203, %205, %cst_103 {dimension_numbers = #tpu.dot_dimension_numbers<[1], [0], [0], [1], [0, 0, 1, 1], [], []>} : vector<8x64xbf16>, vector<64x32xbf16>, vector<8x32xf32> -> vector<8x32xf32>
    %c1_104 = arith.constant 1 : index
    %c0_105 = arith.constant 0 : index
    %c0_106 = arith.constant 0 : index
    %207 = vector.load %arg13[%c1_104, %c0_105, %c0_106] : memref<2x1x32xf32, #tpu.memory_space<vmem>>, vector<1x1x32xf32>
    %208 = vector.shape_cast %207 : vector<1x1x32xf32> to vector<1x32xf32>
    %209 = vector.broadcast %208 : vector<1x32xf32> to vector<8x32xf32>
    %210 = arith.addf %206, %209 : vector<8x32xf32>
    %211 = arith.addf %192, %210 : vector<8x32xf32>
    %c1_107 = arith.constant 1 : index
    %c0_108 = arith.constant 0 : index
    %c0_109 = arith.constant 0 : index
    %212 = vector.load %arg14[%c1_107, %c0_108, %c0_109] : memref<2x1x32xf32, #tpu.memory_space<vmem>>, vector<1x1x32xf32>
    %213 = vector.shape_cast %212 : vector<1x1x32xf32> to vector<1x32xf32>
    %c1_110 = arith.constant 1 : index
    %c0_111 = arith.constant 0 : index
    %c0_112 = arith.constant 0 : index
    %214 = vector.load %arg15[%c1_110, %c0_111, %c0_112] : memref<2x1x32xf32, #tpu.memory_space<vmem>>, vector<1x1x32xf32>
    %215 = vector.shape_cast %214 : vector<1x1x32xf32> to vector<1x32xf32>
    %cst_113 = arith.constant dense<0.000000e+00> : vector<8xf32>
    %216 = vector.multi_reduction <add>, %211, %cst_113 [1] : vector<8x32xf32> to vector<8xf32>
    %217 = vector.shape_cast %216 : vector<8xf32> to vector<8x1xf32>
    %cst_114 = arith.constant 3.200000e+01 : f32
    %218 = vector.broadcast %cst_114 : f32 to vector<8x1xf32>
    %219 = arith.divf %217, %218 : vector<8x1xf32>
    %220 = vector.broadcast %219 : vector<8x1xf32> to vector<8x32xf32>
    %221 = arith.subf %211, %220 : vector<8x32xf32>
    %222 = arith.mulf %221, %221 : vector<8x32xf32>
    %cst_115 = arith.constant dense<0.000000e+00> : vector<8xf32>
    %223 = vector.multi_reduction <add>, %222, %cst_115 [1] : vector<8x32xf32> to vector<8xf32>
    %224 = vector.shape_cast %223 : vector<8xf32> to vector<8x1xf32>
    %cst_116 = arith.constant 3.200000e+01 : f32
    %225 = vector.broadcast %cst_116 : f32 to vector<8x1xf32>
    %226 = arith.divf %224, %225 : vector<8x1xf32>
    %227 = vector.broadcast %219 : vector<8x1xf32> to vector<8x32xf32>
    %228 = arith.subf %211, %227 : vector<8x32xf32>
    %cst_117 = arith.constant 9.99999974E-6 : f32
    %229 = vector.broadcast %cst_117 : f32 to vector<8x1xf32>
    %230 = arith.addf %226, %229 : vector<8x1xf32>
    %231 = math.rsqrt %230 : vector<8x1xf32>
    %232 = vector.broadcast %231 : vector<8x1xf32> to vector<8x32xf32>
    %233 = arith.mulf %228, %232 : vector<8x32xf32>
    %234 = vector.broadcast %213 : vector<1x32xf32> to vector<8x32xf32>
    %235 = arith.mulf %233, %234 : vector<8x32xf32>
    %236 = vector.broadcast %215 : vector<1x32xf32> to vector<8x32xf32>
    %237 = arith.addf %235, %236 : vector<8x32xf32>
    %238 = arith.truncf %237 : vector<8x32xf32> to vector<8x32xbf16>
    %c0_118 = arith.constant 0 : index
    %c0_119 = arith.constant 0 : index
    %239 = vector.load %arg16[%c0_118, %c0_119] : memref<32x128xbf16, #tpu.memory_space<vmem>>, vector<32x128xbf16>
    %cst_120 = arith.constant dense<0.000000e+00> : vector<8x128xf32>
    %240 = tpu.matmul %238, %239, %cst_120 {dimension_numbers = #tpu.dot_dimension_numbers<[1], [0], [0], [1], [0, 0, 1, 1], [], []>} : vector<8x32xbf16>, vector<32x128xbf16>, vector<8x128xf32> -> vector<8x128xf32>
    %c0_121 = arith.constant 0 : index
    %c0_122 = arith.constant 0 : index
    %241 = vector.load %arg17[%c0_121, %c0_122] : memref<1x128xf32, #tpu.memory_space<vmem>>, vector<1x128xf32>
    %242 = vector.broadcast %241 : vector<1x128xf32> to vector<8x128xf32>
    %243 = arith.addf %240, %242 : vector<8x128xf32>
    %244 = vector.shape_cast %243 : vector<8x128xf32> to vector<1x8x128xf32>
    %c0_123 = arith.constant 0 : index
    %c0_124 = arith.constant 0 : index
    %c0_125 = arith.constant 0 : index
    %245 = vector.load %arg18[%c0_123, %c0_124, %c0_125] : memref<1x8x128xf32, #tpu.memory_space<vmem>>, vector<1x8x128xf32>
    tpu.vector_store %arg18[%c0_123, %c0_124, %c0_125], %244 {strides = array<i32>} : memref<1x8x128xf32, #tpu.memory_space<vmem>>, vector<1x8x128xf32>,
    return
  }
  func.func @transform_0(%arg0: i32) -> (i32, i32, i32) {
    %c0_i32 = arith.constant 0 : i32
    %c0_i32_0 = arith.constant 0 : i32
    %c0_i32_1 = arith.constant 0 : i32
    return %arg0, %c0_i32, %c0_i32_0 : i32, i32, i32
  }
  func.func @transform_1(%arg0: i32) -> (i32, i32) {
    %c0_i32 = arith.constant 0 : i32
    %c0_i32_0 = arith.constant 0 : i32
    %c0_i32_1 = arith.constant 0 : i32
    return %c0_i32, %c0_i32_0 : i32, i32
  }
  func.func @transform_2(%arg0: i32) -> (i32, i32) {
    %c0_i32 = arith.constant 0 : i32
    %c0_i32_0 = arith.constant 0 : i32
    %c0_i32_1 = arith.constant 0 : i32
    return %c0_i32, %c0_i32_0 : i32, i32
  }
  func.func @transform_3(%arg0: i32) -> (i32, i32, i32) {
    %c0_i32 = arith.constant 0 : i32
    %c0_i32_0 = arith.constant 0 : i32
    %c0_i32_1 = arith.constant 0 : i32
    %c0_i32_2 = arith.constant 0 : i32
    return %c0_i32, %c0_i32_0, %c0_i32_1 : i32, i32, i32
  }
  func.func @transform_4(%arg0: i32) -> (i32, i32, i32) {
    %c0_i32 = arith.constant 0 : i32
    %c0_i32_0 = arith.constant 0 : i32
    %c0_i32_1 = arith.constant 0 : i32
    %c0_i32_2 = arith.constant 0 : i32
    return %c0_i32, %c0_i32_0, %c0_i32_1 : i32, i32, i32
  }
  func.func @transform_5(%arg0: i32) -> (i32, i32, i32) {
    %c0_i32 = arith.constant 0 : i32
    %c0_i32_0 = arith.constant 0 : i32
    %c0_i32_1 = arith.constant 0 : i32
    %c0_i32_2 = arith.constant 0 : i32
    return %c0_i32, %c0_i32_0, %c0_i32_1 : i32, i32, i32
  }
  func.func @transform_6(%arg0: i32) -> (i32, i32, i32) {
    %c0_i32 = arith.constant 0 : i32
    %c0_i32_0 = arith.constant 0 : i32
    %c0_i32_1 = arith.constant 0 : i32
    %c0_i32_2 = arith.constant 0 : i32
    return %c0_i32, %c0_i32_0, %c0_i32_1 : i32, i32, i32
  }
  func.func @transform_7(%arg0: i32) -> (i32, i32, i32) {
    %c0_i32 = arith.constant 0 : i32
    %c0_i32_0 = arith.constant 0 : i32
    %c0_i32_1 = arith.constant 0 : i32
    %c0_i32_2 = arith.constant 0 : i32
    return %c0_i32, %c0_i32_0, %c0_i32_1 : i32, i32, i32
  }
  func.func @transform_8(%arg0: i32) -> (i32, i32, i32) {
    %c0_i32 = arith.constant 0 : i32
    %c0_i32_0 = arith.constant 0 : i32
    %c0_i32_1 = arith.constant 0 : i32
    %c0_i32_2 = arith.constant 0 : i32
    return %c0_i32, %c0_i32_0, %c0_i32_1 : i32, i32, i32
  }
  func.func @transform_9(%arg0: i32) -> (i32, i32, i32) {
    %c0_i32 = arith.constant 0 : i32
    %c0_i32_0 = arith.constant 0 : i32
    %c0_i32_1 = arith.constant 0 : i32
    %c0_i32_2 = arith.constant 0 : i32
    return %c0_i32, %c0_i32_0, %c0_i32_1 : i32, i32, i32
  }
  func.func @transform_10(%arg0: i32) -> (i32, i32, i32) {
    %c0_i32 = arith.constant 0 : i32
    %c0_i32_0 = arith.constant 0 : i32
    %c0_i32_1 = arith.constant 0 : i32
    %c0_i32_2 = arith.constant 0 : i32
    return %c0_i32, %c0_i32_0, %c0_i32_1 : i32, i32, i32
  }
  func.func @transform_11(%arg0: i32) -> (i32, i32, i32) {
    %c0_i32 = arith.constant 0 : i32
    %c0_i32_0 = arith.constant 0 : i32
    %c0_i32_1 = arith.constant 0 : i32
    %c0_i32_2 = arith.constant 0 : i32
    return %c0_i32, %c0_i32_0, %c0_i32_1 : i32, i32, i32
  }
  func.func @transform_12(%arg0: i32) -> (i32, i32, i32) {
    %c0_i32 = arith.constant 0 : i32
    %c0_i32_0 = arith.constant 0 : i32
    %c0_i32_1 = arith.constant 0 : i32
    %c0_i32_2 = arith.constant 0 : i32
    return %c0_i32, %c0_i32_0, %c0_i32_1 : i32, i32, i32
  }
  func.func @transform_13(%arg0: i32) -> (i32, i32, i32) {
    %c0_i32 = arith.constant 0 : i32
    %c0_i32_0 = arith.constant 0 : i32
    %c0_i32_1 = arith.constant 0 : i32
    %c0_i32_2 = arith.constant 0 : i32
    return %c0_i32, %c0_i32_0, %c0_i32_1 : i32, i32, i32
  }
  func.func @transform_14(%arg0: i32) -> (i32, i32, i32) {
    %c0_i32 = arith.constant 0 : i32
    %c0_i32_0 = arith.constant 0 : i32
    %c0_i32_1 = arith.constant 0 : i32
    %c0_i32_2 = arith.constant 0 : i32
    return %c0_i32, %c0_i32_0, %c0_i32_1 : i32, i32, i32
  }
  func.func @transform_15(%arg0: i32) -> (i32, i32) {
    %c0_i32 = arith.constant 0 : i32
    %c0_i32_0 = arith.constant 0 : i32
    %c0_i32_1 = arith.constant 0 : i32
    return %c0_i32, %c0_i32_0 : i32, i32
  }
  func.func @transform_16(%arg0: i32) -> (i32, i32) {
    %c0_i32 = arith.constant 0 : i32
    %c0_i32_0 = arith.constant 0 : i32
    %c0_i32_1 = arith.constant 0 : i32
    return %c0_i32, %c0_i32_0 : i32, i32
  }
  func.func @transform_17(%arg0: i32) -> (i32, i32, i32) {
    %c0_i32 = arith.constant 0 : i32
    %c0_i32_0 = arith.constant 0 : i32
    %c0_i32_1 = arith.constant 0 : i32
    return %arg0, %c0_i32, %c0_i32_0 : i32, i32, i32
  }
}

</mosaic_0001>

<bundles_post_ra>
// kernel: tpu_custom_call.1
= control target key start
LH: loop header
LB: loop body
LE: loop exit
PB: predicated region body
PF: predicated region fallthrough
CT: control target
= control target key end

     0   :  { %s3483_s0 = inlined_call_operand.vmem [shape: s32[2,8,1], index: 0, kind: input, shape index: {}]   ;;  %s3484_s1 = inlined_call_operand.vmem [shape: bf16[128,16], index: 1, kind: input, shape index: {}]   ;;  %s3485_s2 = inlined_call_operand.vmem [shape: bf16[16,32], index: 2, kind: input, shape index: {}]   ;;  %s3486_s3 = inlined_call_operand.vmem [shape: bf16[2,32,96], index: 3, kind: input, shape index: {}]   ;;  %s3487_s4 = inlined_call_operand.vmem [shape: f32[2,1,96], index: 4, kind: input, shape index: {}]   ;;  %s3488_s5 = inlined_call_operand.vmem [shape: bf16[2,32,32], index: 5, kind: input, shape index: {}]   ;;  %s3489_s6 = inlined_call_operand.vmem [shape: f32[2,1,32], index: 6, kind: input, shape index: {}]   ;;  %s3490_s7 = inlined_call_operand.vmem [shape: f32[2,1,32], index: 7, kind: input, shape index: {}]   ;;  %s3491_s8 = inlined_call_operand.vmem [shape: f32[2,1,32], index: 8, kind: input, shape index: {}]   ;;  %s3492_s9 = inlined_call_operand.vmem [shape: bf16[2,32,64], index: 9, kind: input, shape index: {}]   ;;  %s3493_s10 = inlined_call_operand.vmem [shape: f32[2,1,64], index: 10, kind: input, shape index: {}]   ;;  %s3494_s11 = inlined_call_operand.vmem [shape: bf16[2,64,32], index: 11, kind: input, shape index: {}]   ;;  %s3495_s12 = inlined_call_operand.vmem [shape: f32[2,1,32], index: 12, kind: input, shape index: {}]   ;;  %s3496_s13 = inlined_call_operand.vmem [shape: f32[2,1,32], index: 13, kind: input, shape index: {}]   ;;  %s3497_s14 = inlined_call_operand.vmem [shape: f32[2,1,32], index: 14, kind: input, shape index: {}]   ;;  %s3498_s15 = inlined_call_operand.vmem [shape: bf16[32,128], index: 15, kind: input, shape index: {}]   ;;  %s3499_s16 = inlined_call_operand.vmem [shape: f32[1,128], index: 16, kind: input, shape index: {}]   ;;  %s3500_s17 = inlined_call_operand.hbm [shape: f32[2,8,128], index: 17, kind: output, shape index: {}]  }
   0x1   :  { %3513 = sst [smem:[#allocation11_spill]] %s3483_s0 }
   0x2   :  { %3514 = sst [smem:[#allocation12_spill]] %s3484_s1 }
   0x3   :  { %3515 = sst [smem:[#allocation13_spill]] %s3485_s2 }
   0x4   :  { %3516 = sst [smem:[#allocation14_spill]] %s3486_s3 }
   0x5   :  { %3517 = sst [smem:[#allocation15_spill]] %s3499_s16 }
   0x6   :  { %22 = vsyncpa [#allocation3], 0 }
   0x7   :  { %24 = vsyncpa [#allocation3 + $0x1], 0  ;;  %s3050_s24 = smov 0   ;;  %s3052_s25 = smov 0  }
   0x8   :  { %s3054_s26 = smov 0   ;;  %s3056_s27 = smov 0  }
   0x9 LB: > { %3518 = sst [smem:[#allocation5_spill]] %s2933_s24  ;;  %s3071_s28 = sadd.s32 4294967295, %s2945_s27   ;;  %s2945_s27 = sphi %s3056_s27, %s3538_s27   ;;  %s2941_s26 = sphi %s3054_s26, %s3540_s26   ;;  %s2937_s25 = sphi %s3052_s25, %s3542_s25   ;;  %s2933_s24 = sphi %s3050_s24, %s3541_s24  }
   0xa   : > { %3519 = sst [smem:[#allocation6_spill]] %s2941_s26  ;;  %s2501_s29 = sadd.s32 4294967294, %s2945_s27  }
   0xb   : > { %3520 = sst [smem:[#allocation7_spill]] %s2945_s27  ;;  %s3075_s0 = sadd.s32 1, %s2945_s27  }
   0xc   : > { %3521 = sst [smem:[#allocation8_spill]] %s3075_s0  ;;  %s399_s30 = sadd.s32 1, %s2941_s26 }
   0xd   : > { %s396_s18 = ssub.s32 %s2945_s27, %s3075_s0  ;;  %p409_p0 = scmp.ne.s32.totalorder %s2941_s26, %s2937_s25 }
   0xe   : > { %p397_p1 = scmp.eq.s32.totalorder %s396_s18, 0  ;;  %p410_p2 = scmp.eq.s32.totalorder %s3071_s28, 1 }
   0xf   : > { %p415_p3 = scmp.ne.s32.totalorder %s2937_s25, %s2933_s24  ;;  %p416_p4 = scmp.eq.s32.totalorder %s2501_s29, 1 }
  0x10   : > { %s3086_s19 = scalar_select %p397_p1, %s2941_s26, %s399_s30  }
  0x11   : > { %p3088_p5 = por %p410_p2, %p409_p0  ;;  %p3092_p6 = por %p416_p4, %p415_p3 }
  0x12   : > { %3522 = sst [smem:[#allocation9_spill]] %s3086_s19  ;;  %p2504_p7 = scmp.ge.s32.totalorder %s2945_s27, 1 }
  0x13   : > { %s3524_s20 = scalar_select %p3092_p6, 1, 0 }
  0x14   : > { %p489_p8 = scmp.lt.s32.totalorder %s2945_s27, 3 }
  0x15   : > { %3525 = sst [smem:[#allocation10_spill]] %s3524_s20 }
  0x16   : > { %p490_p9 = pnand %p2504_p7, %p489_p8 }
  0x17   : > { %p540_p10 = scmp.lt.s32.totalorder (!%p490_p9), %s3071_s28, 1  ;;  %s3526_s23 = sld [smem:[#allocation12_spill]] (!%p490_p9) }
  0x18   : > { %493 = sbr.rel (%p490_p9) target bundleno = 5434 (0x153a), region = 88  ;;  %s3527_s27 = sld [smem:[#allocation11_spill]] (!%p490_p9) }
  0x19   : > { %s3528_s2 = sld [smem:[#allocation13_spill]] (!%p490_p9)  ;;  %s2949_s24 = smov (!%p490_p9), 104  }
  0x1a   : > { %s3529_s3 = sld [smem:[#allocation14_spill]] (!%p490_p9)  ;;  %s3511_s20 = smov (!%p490_p9), 64  }
  0x1b   : > { %s3509_s21 = smov (!%p490_p9), 16   ;;  %s3508_s22 = smov (!%p490_p9), 8  }
  0x1d   : > { %v2694_v0 = vld [vmem:[%s3526_s23 + $0x38] sm:$0xff]  ;;  %v2947_v1 = vmov 0   ;;  %s541_s29 = scalar_select %p540_p10, %s3071_s28, 1  ;;  %v2693_v2 = vld [vmem:[%s3526_s23 + $0x30] sm:$0xff]  ;;  %v2692_v3 = vld [vmem:[%s3526_s23 + $0x28] sm:$0xff]  ;;  %v546_v12 = vlaneseq  ;;  %vm635_vm2 = vcmask 130048  }
  0x1e   : > { %2774 = vset.pattern.permute.xlu0 %v2947_v1  ;;  %618 = vmatpush.bf16.msra.mxu0 %v2694_v0  ;;  %v2691_v5 = vld [vmem:[%s3526_s23 + $0x20] sm:$0xff]  ;;  %v2690_v6 = vld [vmem:[%s3526_s23 + $0x18] sm:$0xff]  ;;  %v2689_v7 = vld [vmem:[%s3526_s23 + $0x10] sm:$0xff]  ;;  %v2948_v15 = vmov 1.0|1.0   ;;  %vm680_vm3 = vcmask 261120  }
  0x1f   : > { %s2506_s19 = sshll.u32 %s541_s29, 3  ;;  %v2688_v8 = vld [vmem:[%s3526_s23 + $0x8] sm:$0xff]  ;;  %v2687_v9 = vld [vmem:[%s3526_s23] sm:$0xff]  ;;  %v547_v13 = vand.u32 127, %v546_v12  ;;  %vm793_vm4 = vcmask 1043456   ;;  %vm789_vm5 = vcmask 64512  }
  0x20   : > { %s543_s16 = scalar_lea.vmem %s3527_s27, %s2506_s19  ;;  %v2718_v10 = vld [vmem:[%s3528_s2] sm:$0xff]   ;;  %v2696_v17 = vld [vmem:[%s3529_s3 + $0x8] sm:$0xff]  ;;  %s2951_s27 = smov 96   ;;  %vm1196_vm6 = vcmask 1047556   ;;  %vm1320_vm7 = vcmask 195584   ;;  %vm1474_vm12 = vcmask 523264  }
  0x21   : > { %v545_v4 = vld [vmem:[%s543_s16] sm:$0xff]  ;;  %v2720_v11 = vunpack.c.h.bf16 %v2718_v10  ;;  %v2719_v16 = vunpack.c.l.bf16 %v2718_v10  ;;  %690 = vmatpush.bf16.msra.mxu2 %v2696_v17  ;;  %s2950_s16 = smov 112   ;;  %s2952_s19 = smov 120  }
  0x22   : > { %619 = vmatpush.bf16.msra.mxu0 %v2693_v2  ;;  %549 = vperm.xlu0 %2774, %v545_v4   ;;  %v2695_v20 = vld [vmem:[%s3529_s3] sm:$0xff]  ;;  %s3510_s29 = smov 24  }
  0x23   : > { %v2824_v23 = vld [vmem:[%s3487_s4] ss:$0 sm:$0xff] }
  0x25   : > { %691 = vmatpush.bf16.msra.mxu2 %v2695_v20 }
  0x26   : > { %620 = vmatpush.bf16.msra.mxu0 %v2692_v3 }
  0x2a   : > { %621 = vmatpush.bf16.msra.mxu0 %v2691_v5 }
  0x2e   : > { %622 = vmatpush.bf16.msra.mxu0 %v2690_v6 }
  0x32   : > { %623 = vmatpush.bf16.msra.mxu0 %v2689_v7 }
  0x36   : > { %624 = vmatpush.bf16.msra.mxu0 %v2688_v8 }
  0x3a   : > { %625 = vmatpush.bf16.msra.mxu0 %v2687_v9 }
  0x3e   : > { %653 = vmatpush.msrb.mxu0 %v2720_v11 }
  0x40   : > { %654 = vmatpush.msrb.mxu0 %v2719_v16 }
  0x94   : > { %v550_v14 = vpop.permute.xlu0 %549 }
  0x95   : > { %vm551_vm0 = vcmp.eq.s32.totalorder %v550_v14, %v547_v13 }
  0x96   : > { %vm2539_vm1 = vmpackc.low %vm551_vm0, %vm551_vm0 }
  0x97   : > { %2540 = vmatmul.msk.bf16.vlgmr.msra.gmra.mxu0 %vm2539_vm1, %v2948_v15 }
 0x114   : > { %v627_v18 = vpop.f32.mrf.mxu0 }
 0x115   : > { %2541 = vmatmul.msk.f32.vlgmr.msrb.gmra.mxu0 %vm635_vm2, %v627_v18 }
 0x11c   : > { %v629_v19 = vpop.f32.mrf.mxu0 }
 0x192   : > { %v3137_v21 = vpop.f32.mrf.mxu0 }
 0x193   : > { %v659_v22 = vpack.c.bf16 %v3137_v21, %v3137_v21 }
 0x195   : > { %2550 = vmatmul.msk.bf16.vlgmr.msra.gmra.mxu2 %vm680_vm3, %v659_v22 }
 0x218   : > { %v693_v24 = vpop.f32.mrf.mxu2 }
 0x219   : > { %v694_v25 = vadd.f32 %v2824_v23, %v693_v24 }
 0x21b   : > { %v697_v26 = vpack.c.bf16 %v694_v25, %v694_v25 }
 0x21d   : > { %703 = vrot.lane.b32.xlu1 %v697_v26, %s2949_s24  ;;  %701 = vrot.lane.b32.xlu0 %v697_v26, %s2950_s16  ;;  %v705_v27 = vunpack.c.l.b16 %v697_v26 }
 0x21f   : > { %v709_v28 = vpack.c.b16 %v705_v27, %v705_v27 }
 0x220   : > { %v695_v29 = vpop.f32.mrf.mxu2 }
 0x221   : > { %713 = vrot.lane.b32.xlu2 %v709_v28, %s2951_s27 }
 0x225   : > { %699 = vrot.lane.b32.xlu1 %v697_v26, %s2952_s19 }
 0x27b   : > { %v714_v39 = vpop.permute.xlu2 %713 }
 0x28f   : > { %v704_v30 = vpop.permute.xlu1 %703  ;;  %v702_v31 = vpop.permute.xlu0 %701 }
 0x290   : > { %v708_v32 = vunpack.c.l.b16 %v704_v30  ;;  %v707_v33 = vunpack.c.l.b16 %v702_v31 }
 0x292   : > { %v712_v34 = vpack.c.b16 %v708_v32, %v708_v32  ;;  %v711_v35 = vpack.c.b16 %v707_v33, %v707_v33 }
 0x294   : > { %719 = vrot.lane.b32.xlu0 %v712_v34, %s2951_s27  ;;  %717 = vrot.lane.b32.xlu2 %v711_v35, %s2951_s27 }
 0x297   : > { %v700_v36 = vpop.permute.xlu1 %699 }
 0x298   : > { %v706_v37 = vunpack.c.l.b16 %v700_v36 }
 0x29a   : > { %v710_v38 = vpack.c.b16 %v706_v37, %v706_v37 }
 0x29c   : > { %715 = vrot.lane.b32.xlu1 %v710_v38, %s2951_s27 }
 0x2ba   : > { %725 = vxpose.xlu2.c.b16.start.end [1/1] (short) (narrow) %v714_v39, 16 }
 0x2ee   : > { %v718_v40 = vpop.permute.xlu2 %717 }
 0x306   : > { %v720_v41 = vpop.permute.xlu0 %719 }
 0x307   : > { %2775 = vxpose.binary.xlu0.c.b16.start.end [1/2] (short) (narrow) %v720_v41, %v718_v40, 16 }
 0x30e   : > { %v716_v42 = vpop.permute.xlu1 %715 }
 0x30f   : > { %741 = vxpose.xlu1.c.b16.start.end [1/1] (short) (narrow) %v716_v42, 16 }
 0x35b   : > { %v733_v43 = vpop.trf.xlu2 }
 0x35c   : > { %v795_v44 = vsel %vm793_vm4, %v733_v43, 0 }
 0x35d   : > { %804 = vmatpush.bf16.msra.mxu3 %v795_v44 }
 0x360   : > { %2551 = vmatmul.msk.bf16.vlgmr.msra.gmra.mxu3 %vm789_vm5, %v697_v26 }
 0x3b3   : > { %v2776_v45 = vpop.trf.xlu0 }
 0x3b4   : > { %v833_v46 = vsel %vm793_vm4, %v2776_v45, 0 }
 0x3b5   : > { %842 = vmatpush.bf16.msrb.mxu3 %v833_v46 }
 0x3b8   : > { %2553 = vmatmul.msk.bf16.vlgmr.msrb.gmra.mxu3 %vm789_vm5, %v702_v31 }
 0x3bb   : > { %v749_v47 = vpop.trf.xlu1  ;;  %v2777_v48 = vpop.trf.xlu0 }
 0x3bc   : > { %v814_v49 = vsel %vm793_vm4, %v749_v47, 0  ;;  %v852_v50 = vsel %vm793_vm4, %v2777_v48, 0 }
 0x3bd   : > { %823 = vmatpush.bf16.msra.mxu1 %v814_v49  ;;  %861 = vmatpush.bf16.msrb.mxu2 %v852_v50 }
 0x3c0   : > { %2552 = vmatmul.msk.bf16.vlgmr.msra.gmra.mxu1 %vm789_vm5, %v700_v36  ;;  %2554 = vmatmul.msk.bf16.vlgmr.msrb.gmra.mxu2 %vm789_vm5, %v704_v30 }
 0x3e3   : > { %v806_v51 = vpop.f32.mrf.mxu3 }
 0x3e4   : > { %v867_v52 = vsel %vm789_vm5, %v806_v51, -inf }
 0x3e5   : > { %868 = vmax.xlane.f32.xlu2 %v867_v52 }
 0x3eb   : > { %v808_v53 = vpop.f32.mrf.mxu3 }
 0x3fd   : > { %919 = vrot.lane.b32.xlu2 %v711_v35, %s3511_s20 }
 0x43b   : > { %v844_v54 = vpop.f32.mrf.mxu3 }
 0x43c   : > { %v873_v55 = vsel %vm789_vm5, %v844_v54, -inf }
 0x43d   : > { %v825_v56 = vpop.f32.mrf.mxu1  ;;  %874 = vmax.xlane.f32.xlu0 %v873_v55 }
 0x43e   : > { %v870_v57 = vsel %vm789_vm5, %v825_v56, -inf }
 0x43f   : > { %871 = vmax.xlane.f32.xlu1 %v870_v57 }
 0x443   : > { %v846_v58 = vpop.f32.mrf.mxu3  ;;  %v863_v59 = vpop.f32.mrf.mxu2 }
 0x444   : > { %v876_v60 = vsel %vm789_vm5, %v863_v59, -inf }
 0x445   : > { %v827_v61 = vpop.f32.mrf.mxu1  ;;  %877 = vmax.xlane.f32.xlu2 %v876_v60 }
 0x446   : > { %v2954_v61 = vmov 1983009808  }
 0x44b   : > { %v865_v62 = vpop.f32.mrf.mxu2 }
 0x44c   : > { %v1201_v62 = vunpack.c.l.s4 %v2954_v61 }
 0x451   : > { %915 = vrot.lane.b32.xlu0 %v709_v28, %s3511_s20 }
 0x458   : > { %917 = vrot.lane.b32.xlu1 %v710_v38, %s3511_s20  ;;  %v869_v63 = vpop.xlane.xlu2 %868 }
 0x459   : > { %v879_v0 = vsub.f32 %v806_v51, %v869_v63 }
 0x45b   : > { %v883_v1 = vmul.f32 1.442695, %v879_v0 }
 0x45d   : > { %921 = vrot.lane.b32.xlu2 %v712_v34, %s3511_s20  ;;  %2841 = vpow2.f32 %v883_v1  ;;  %v3180_v1 = vunpack.c.0.s8 %v1201_v62 }
 0x460   : > { %v920_v4 = vpop.permute.xlu2 %919 }
 0x463   : > { %v2842_v2 = vpop.eup %2841 }
 0x464   : > { %v891_v3 = vsel %vm789_vm5, %v2842_v2, 0.0 }
 0x482   : > { %892 = vadd.xlane.f32.xlu1 %v891_v3 }
 0x4b0   : > { %v875_v5 = vpop.xlane.xlu0 %874 }
 0x4b1   : > { %v881_v6 = vsub.f32 %v844_v54, %v875_v5 }
 0x4b2   : > { %v872_v7 = vpop.xlane.xlu1 %871 }
 0x4b3   : > { %v887_v8 = vmul.f32 1.442695, %v881_v6  ;;  %v880_v9 = vsub.f32 %v825_v56, %v872_v7 }
 0x4b5   : > { %2843 = vpow2.f32 %v887_v8  ;;  %v885_v10 = vmul.f32 1.442695, %v880_v9 }
 0x4b7   : > { %2845 = vpow2.f32 %v885_v10 }
 0x4b8   : > { %v878_v11 = vpop.xlane.xlu2 %877 }
 0x4b9   : > { %v882_v12 = vsub.f32 %v863_v59, %v878_v11 }
 0x4bb   : > { %v2844_v13 = vpop.eup %2843  ;;  %v889_v14 = vmul.f32 1.442695, %v882_v12 }
 0x4bc   : > { %v897_v15 = vsel %vm789_vm5, %v2844_v13, 0.0 }
 0x4bd   : > { %v2846_v16 = vpop.eup %2845  ;;  %2847 = vpow2.f32 %v889_v14  ;;  %898 = vadd.xlane.f32.xlu1 %v897_v15 }
 0x4be   : > { %v894_v17 = vsel %vm789_vm5, %v2846_v16, 0.0 }
 0x4bf   : > { %895 = vadd.xlane.f32.xlu0 %v894_v17 }
 0x4c0   : > { %v922_v20 = vpop.permute.xlu2 %921 }
 0x4c3   : > { %v2848_v18 = vpop.eup %2847  ;;  %v916_v24 = vpop.permute.xlu0 %915 }
 0x4c4   : > { %v900_v19 = vsel %vm789_vm5, %v2848_v18, 0.0 }
 0x4c5   : > { %901 = vadd.xlane.f32.xlu2 %v900_v19 }
 0x4ca   : > { %v918_v22 = vpop.permute.xlu1 %917 }
 0x4e8   : > { %2781 = vxpose.binary.xlu0.c.b16.start.end [1/2] (short) (narrow) %v922_v20, %v918_v22, 16 }
 0x4f5   : > { %v893_v23 = vpop.xlane.xlu1 %892 }
 0x4f6   : > { %2849 = vrcp.f32 %v893_v23 }
 0x4f7   : > { %2778 = vxpose.binary.xlu1.c.b16.start.end [1/2] (short) (narrow) %v920_v4, %v916_v24, 16  ;;  %v2955_v4 = vmov 1934713408  }
 0x4f8   : > { %v1225_v5 = vunpack.c.l.s4 %v2955_v4 }
 0x4fc   : > { %v2850_v25 = vpop.eup %2849 }
 0x4fd   : > { %v907_v26 = vmul.f32 %v2850_v25, %v2842_v2 }
 0x4ff   : > { %v911_v27 = vpack.c.bf16 %v907_v26, %v907_v26 }
 0x501   : > { %v995_v28 = vsel %vm789_vm5, %v911_v27, 0 }
 0x502   : > { %1004 = vmatpush.bf16.xpose.msrb.mxu1 %v995_v28 }
 0x530   : > { %v899_v29 = vpop.xlane.xlu1 %898 }
 0x531   : > { %2851 = vrcp.f32 %v899_v29 }
 0x532   : > { %v896_v30 = vpop.xlane.xlu0 %895 }
 0x533   : > { %2853 = vrcp.f32 %v896_v30 }
 0x537   : > { %v2852_v31 = vpop.eup %2851 }
 0x538   : > { %v902_v32 = vpop.xlane.xlu2 %901  ;;  %v909_v33 = vmul.f32 %v2852_v31, %v2844_v13  ;;  %v3186_v13 = vunpack.c.0.s8 %v1225_v5 }
 0x539   : > { %v2854_v34 = vpop.eup %2853  ;;  %2855 = vrcp.f32 %v902_v32 }
 0x53a   : > { %v913_v35 = vpack.c.bf16 %v909_v33, %v909_v33  ;;  %v908_v36 = vmul.f32 %v2854_v34, %v2846_v16 }
 0x53c   : > { %v1033_v37 = vsel %vm789_vm5, %v913_v35, 0  ;;  %v912_v38 = vpack.c.bf16 %v908_v36, %v908_v36 }
 0x53d   : > { %1042 = vmatpush.bf16.xpose.msra.mxu2 %v1033_v37 }
 0x53e   : > { %v1014_v39 = vsel %vm789_vm5, %v912_v38, 0 }
 0x53f   : > { %v2856_v40 = vpop.eup %2855  ;;  %1023 = vmatpush.bf16.xpose.msra.mxu3 %v1014_v39 }
 0x540   : > { %v910_v41 = vmul.f32 %v2856_v40, %v2848_v18 }
 0x542   : > { %v914_v42 = vpack.c.bf16 %v910_v41, %v910_v41 }
 0x544   : > { %v1052_v43 = vsel %vm789_vm5, %v914_v42, 0 }
 0x545   : > { %1061 = vmatpush.bf16.xpose.msra.mxu1 %v1052_v43 }
 0x594   : > { %v2782_v44 = vpop.trf.xlu0 }
 0x595   : > { %2556 = vmatmul.msk.bf16.vlgmr.msra.gmra.mxu3 %vm789_vm5, %v2782_v44 }
 0x59c   : > { %v2783_v47 = vpop.trf.xlu0 }
 0x5a3   : > { %v2779_v45 = vpop.trf.xlu1 }
 0x5a4   : > { %2555 = vmatmul.msk.bf16.vlgmr.msrb.gmra.mxu1 %vm789_vm5, %v2779_v45 }
 0x5ab   : > { %v2780_v46 = vpop.trf.xlu1 }
 0x5ac   : > { %2557 = vmatmul.msk.bf16.vlgmr.msra.gmra.mxu2 %vm789_vm5, %v2780_v46 }
 0x5b4   : > { %2558 = vmatmul.msk.bf16.vlgmr.msra.gmra.mxu1 %vm789_vm5, %v2783_v47 }
 0x618   : > { %v1025_v48 = vpop.f32.mrf.mxu3 }
 0x620   : > { %v1027_v49 = vpop.f32.mrf.mxu3 }
 0x621   : > { %v1006_v50 = vpop.f32.mrf.mxu1 }
 0x629   : > { %v1008_v51 = vpop.f32.mrf.mxu1 }
 0x62f   : > { %v1044_v52 = vpop.f32.mrf.mxu2 }
 0x630   : > { %v2791_v53 = vpack.i.bf16 %v1006_v50, %v1044_v52 }
 0x631   : > { %v1063_v54 = vpop.f32.mrf.mxu1 }
 0x632   : > { %v2784_v55 = vpack.i.bf16 %v1025_v48, %v1063_v54  ;;  %2792 = vxpose.xlu2.b32.start.end [1/1] (short) (narrow) %v2791_v53, 8 }
 0x634   : > { %2785 = vxpose.xlu1.b32.start.end [1/1] (short) (narrow) %v2784_v55, 8 }
 0x637   : > { %v1046_v56 = vpop.f32.mrf.mxu2 }
 0x639   : > { %v1065_v57 = vpop.f32.mrf.mxu1 }
 0x6cb   : > { %v2793_v58 = vpop.trf.xlu2 }
 0x6cc   : > { %v2797_v59 = vunpack.i.h.bf16 %v2793_v58  ;;  %v2794_v60 = vunpack.i.l.bf16 %v2793_v58 }
 0x6ce   : > { %v1198_v63 = vrot.slane %v2797_v59, 4  ;;  %v1195_v0 = vrot.slane %v2794_v60, 4 }
 0x6d0   : > { %v1197_v2 = vsel %vm1196_vm6, %v1195_v0, %v2797_v59  ;;  %v1199_v3 = vsel %vm1196_vm6, %v2794_v60, %v1198_v63 }
 0x6d1   : > { %v1203_v9 = vperm.slane %v1197_v2, %v3180_v1  ;;  %v1207_v10 = vperm.slane %v1199_v3, %v3180_v1 }
 0x6d3   : > { %v1222_v16 = vrot.slane %v1203_v9, 4  ;;  %v1234_v17 = vrot.slane %v1207_v10, 4 }
 0x6d8   : > { %v2786_v6 = vpop.trf.xlu1 }
 0x6d9   : > { %v2790_v7 = vunpack.i.h.bf16 %v2786_v6  ;;  %v2787_v8 = vunpack.i.l.bf16 %v2786_v6  ;;  %v2698_v6 = vld [vmem:[%s3488_s5 + $0x8] sm:$0xff] }
 0x6da   : > { %1352 = vmatpush.bf16.msra.mxu0 %v2698_v6 }
 0x6db   : > { %v1210_v11 = vrot.slane %v2790_v7, 4  ;;  %v1208_v12 = vrot.slane %v2787_v8, 4 }
 0x6dd   : > { %v1209_v14 = vsel %vm1196_vm6, %v1208_v12, %v2790_v7  ;;  %v1211_v15 = vsel %vm1196_vm6, %v2787_v8, %v1210_v11  ;;  %v2697_v7 = vld [vmem:[%s3488_s5] sm:$0xff] }
 0x6de   : > { %v1215_v18 = vperm.slane %v1209_v14, %v3180_v1  ;;  %v1219_v19 = vperm.slane %v1211_v15, %v3180_v1  ;;  %1353 = vmatpush.bf16.msra.mxu0 %v2697_v7 }
 0x6e0   : > { %v1220_v20 = vrot.slane %v1215_v18, 4  ;;  %v1223_v22 = vsel %vm1196_vm6, %v1215_v18, %v1222_v16  ;;  %v1232_v23 = vrot.slane %v1219_v19, 4  ;;  %v1235_v24 = vsel %vm1196_vm6, %v1219_v19, %v1234_v17  ;;  %v2825_v16 = vld [vmem:[%s3489_s6] ss:$0 sm:$0xff] }
 0x6e1   : > { %v1231_v25 = vperm.slane %v1223_v22, %v3186_v13  ;;  %v1243_v26 = vperm.slane %v1235_v24, %v3186_v13 }
 0x6e2   : > { %v1221_v27 = vsel %vm1196_vm6, %v1220_v20, %v1203_v9  ;;  %v1233_v28 = vsel %vm1196_vm6, %v1232_v23, %v1207_v10  ;;  %v2959_v23 = vmov 32.0  }
 0x6e3   : > { %v1227_v29 = vperm.slane %v1221_v27, %v3186_v13  ;;  %v1239_v30 = vperm.slane %v1233_v28, %v3186_v13  ;;  %v1246_v31 = vrot.slane %v1231_v25, 4  ;;  %v1250_v32 = vrot.slane %v1243_v26, 4 }
 0x6e4   : > { %2857 = vrcp.f32 %v2959_v23  ;;  %v2830_v23 = vld [vmem:[%s3496_s13] ss:$0 sm:$0xff] }
 0x6e5   : > { %v1247_v33 = vsel %vm1196_vm6, 0.0, %v1246_v31  ;;  %v1244_v34 = vrot.slane %v1227_v29, 4  ;;  %v1248_v35 = vrot.slane %v1239_v30, 4  ;;  %v1251_v36 = vsel %vm1196_vm6, 0.0, %v1250_v32 }
 0x6e6   : > { %v1252_v37 = vsel %vm1196_vm6, %v1246_v31, %v1227_v29  ;;  %v1257_v38 = vrot.slane %v1247_v33, 4  ;;  %v1263_v39 = vsel %vm1196_vm6, %v1250_v32, %v1239_v30  ;;  %v1268_v40 = vrot.slane %v1251_v36, 4  ;;  %v2704_v36 = vld [vmem:[%s3494_s11 + $0x18] sm:$0xff] }
 0x6e7   : > { %v1245_v41 = vsel %vm1196_vm6, 0.0, %v1244_v34  ;;  %v1249_v42 = vsel %vm1196_vm6, 0.0, %v1248_v35  ;;  %v1256_v43 = vperm.slane %v1252_v37, %v3180_v1  ;;  %v1267_v44 = vperm.slane %v1263_v39, %v3180_v1  ;;  %v2700_v34 = vld [vmem:[%s3492_s9 + $0x8] sm:$0xff]  ;;  %v2699_v35 = vld [vmem:[%s3492_s9] sm:$0xff]  ;;  %1482 = vmatpush.bf16.msrb.mxu2 %v2704_v36  ;;  %v2703_v39 = vld [vmem:[%s3494_s11 + $0x10] sm:$0xff] }
 0x6e8   : > { %v1258_v45 = vsel %vm1196_vm6, %v1257_v38, %v1245_v41  ;;  %v1269_v46 = vsel %vm1196_vm6, %v1268_v40, %v1249_v42  ;;  %1429 = vmatpush.bf16.msrb.mxu3 %v2700_v34 }
 0x6e9   : > { %v1262_v47 = vperm.slane %v1258_v45, %v3180_v1  ;;  %v1273_v48 = vperm.slane %v1269_v46, %v3180_v1  ;;  %v1276_v49 = vrot.slane %v1256_v43, 4  ;;  %v1288_v50 = vrot.slane %v1267_v44, 4 }
 0x6ea   : > { %v2858_v24 = vpop.eup %2857 }
 0x6eb   : > { %v1277_v51 = vsel %vm1196_vm6, %v1262_v47, %v1276_v49  ;;  %v1289_v52 = vsel %vm1196_vm6, %v1273_v48, %v1288_v50  ;;  %v1274_v53 = vrot.slane %v1262_v47, 4  ;;  %v1286_v54 = vrot.slane %v1273_v48, 4  ;;  %1483 = vmatpush.bf16.msrb.mxu2 %v2703_v39  ;;  %v2826_v47 = vld [vmem:[%s3490_s7] ss:$0 sm:$0xff] }
 0x6ec   : > { %v1285_v55 = vperm.slane %v1277_v51, %v3186_v13  ;;  %v1297_v56 = vperm.slane %v1289_v52, %v3186_v13  ;;  %v1366_v25 = vmul.f32 32.0, %v2858_v24  ;;  %vm1370_vm8 = vweird.f32 %v2858_v24  ;;  %1430 = vmatpush.bf16.msrb.mxu3 %v2699_v35  ;;  %v2827_v49 = vld [vmem:[%s3491_s8] ss:$0 sm:$0xff] }
 0x6ed   : > { %v1275_v57 = vsel %vm1196_vm6, %v1274_v53, %v1256_v43  ;;  %v1287_v58 = vsel %vm1196_vm6, %v1286_v54, %v1267_v44  ;;  %v2702_v54 = vld [vmem:[%s3494_s11 + $0x8] sm:$0xff] }
 0x6ee   : > { %v1304_v59 = vrot.slane %v1285_v55, 4  ;;  %v1302_v60 = vrot.slane %v1297_v56, 4  ;;  %v1281_v61 = vperm.slane %v1275_v57, %v3186_v13  ;;  %v1293_v62 = vperm.slane %v1287_v58, %v3186_v13 }
 0x6ef   : > { %v1367_v26 = vsub.f32 1.0, %v1366_v25  ;;  %1484 = vmatpush.bf16.msrb.mxu2 %v2702_v54  ;;  %v2831_v25 = vld [vmem:[%s3497_s14] ss:$0 sm:$0xff] }
 0x6f0   : > { %v1305_v63 = vsel %vm1196_vm6, %v1297_v56, %v1304_v59  ;;  %v1303_v0 = vsel %vm1196_vm6, %v1302_v60, %v1285_v55  ;;  %v1298_v2 = vrot.slane %v1293_v62, 4  ;;  %v1300_v3 = vrot.slane %v1281_v61, 4  ;;  %v2701_v55 = vld [vmem:[%s3494_s11] sm:$0xff] }
 0x6f1   : > { %1315 = vrot.lane.b32.xlu2 %v1305_v63, %s3510_s29  ;;  %1311 = vrot.lane.b32.xlu1 %v1303_v0, %s3509_s21  ;;  %v1368_v27 = vmul.f32 %v2858_v24, %v1367_v26  ;;  %v2828_v56 = vld [vmem:[%s3493_s10] ss:$0 sm:$0xff]  ;;  %s3534_s29 = sld [smem:[#allocation15_spill]]  ;;  %s2903_s21 = scalar_lea.hbm %s3500_s17, 16 }
 0x6f2   : > { %v1301_v4 = vsel %vm1196_vm6, %v1293_v62, %v1300_v3  ;;  %v1299_v5 = vsel %vm1196_vm6, %v1298_v2, %v1281_v61  ;;  %v2829_v62 = vld [vmem:[%s3495_s12] ss:$0 sm:$0xff] }
 0x6f3   : > { %1307 = vrot.lane.b32.xlu0 %v1301_v4, %s3508_s22  ;;  %v1369_v28 = vadd.f32 %v2858_v24, %v1368_v27  ;;  %1485 = vmatpush.bf16.msrb.mxu2 %v2701_v55 }
 0x6f5   : > { %v3242_v29 = vsel %vm1370_vm8, %v2858_v24, %v1369_v28 }
 0x74b   : > { %v1316_v11 = vpop.permute.xlu2 %1315 }
 0x763   : > { %v1312_v9 = vpop.permute.xlu1 %1311 }
 0x765   : > { %v1308_v8 = vpop.permute.xlu0 %1307 }
 0x766   : > { %v1318_v10 = vsel %vm789_vm5, %v1299_v5, %v1308_v8 }
 0x767   : > { %v1319_v12 = vsel %vm635_vm2, %v1318_v10, %v1312_v9  ;;  %v2706_v10 = vld [vmem:[%s3529_s3 + $0x18] sm:$0xff] }
 0x768   : > { %v1321_v14 = vsel %vm1320_vm7, %v1319_v12, %v1316_v11  ;;  %1556 = vmatpush.bf16.msrb.mxu1 %v2706_v10  ;;  %v2705_v11 = vld [vmem:[%s3529_s3 + $0x10] sm:$0xff] }
 0x769   : > { %v1322_v15 = vpack.c.bf16 %v1321_v14, %v1321_v14 }
 0x76b   : > { %2567 = vmatmul.msk.bf16.vlgmr.msra.gmra.mxu0 %vm680_vm3, %v1322_v15 }
 0x76c   : > { %1557 = vmatpush.bf16.msrb.mxu1 %v2705_v11 }
 0x7e8   : > { %v1355_v17 = vpop.f32.mrf.mxu0 }
 0x7e9   : > { %v1356_v18 = vadd.f32 %v2825_v16, %v1355_v17 }
 0x7eb   : > { %v1359_v19 = vadd.f32 %v1356_v18, %v3137_v21 }
 0x7ed   : > { %v1362_v20 = vsel %vm680_vm3, %v1359_v19, 0.0 }
 0x7ee   : > { %1363 = vadd.xlane.f32.xlu1 %v1362_v20 }
 0x7f0   : > { %v1357_v22 = vpop.f32.mrf.mxu0 }
 0x861   : > { %v1364_v30 = vpop.xlane.xlu1 %1363 }
 0x862   : > { %v1372_v31 = vmul.f32 %v3242_v29, %v1364_v30 }
 0x864   : > { %v1373_v32 = vsub.f32 %v1359_v19, %v1372_v31  ;;  %v2832_v31 = vld [vmem:[%s3487_s4 + $0x1] ss:$0 sm:$0xff] }
 0x866   : > { %v1374_v33 = vmul.f32 %v1373_v32, %v1373_v32 }
 0x868   : > { %v1375_v21 = vsel %vm680_vm3, %v1374_v33, 0.0 }
 0x869   : > { %1376 = vadd.xlane.f32.xlu0 %v1375_v21 }
 0x8dc   : > { %v1377_v37 = vpop.xlane.xlu0 %1376 }
 0x8dd   : > { %v1378_v38 = vmul.f32 %v1377_v37, %v3242_v29 }
 0x8df   : > { %v1379_v40 = vadd.f32 1e-05, %v1378_v38 }
 0x8e1   : > { %2859 = vrsqrt.f32 %v1379_v40  ;;  %vm1386_vm10 = vweird.f32 %v1379_v40 }
 0x8e7   : > { %v2860_v41 = vpop.eup %2859 }
 0x8e8   : > { %v1381_v42 = vmul.f32 %v2860_v41, %v1379_v40  ;;  %vm1387_vm9 = vweird.f32 %v2860_v41 }
 0x8e9   : > { %vm1388_vm11 = vmor %vm1386_vm10, %vm1387_vm9 }
 0x8ea   : > { %v1382_v43 = vmul.f32 %v2860_v41, %v1381_v42 }
 0x8ec   : > { %v1383_v44 = vmul.f32 0.5, %v1382_v43 }
 0x8ee   : > { %v1384_v45 = vsub.f32 1.5, %v1383_v44 }
 0x8f0   : > { %v1385_v46 = vmul.f32 %v2860_v41, %v1384_v45 }
 0x8f2   : > { %v1389_v48 = vsel %vm1388_vm11, %v2860_v41, %v1385_v46 }
 0x8f3   : > { %v1390_v50 = vmul.f32 %v1389_v48, %v1373_v32 }
 0x8f5   : > { %v1394_v51 = vmul.f32 %v2826_v47, %v1390_v50 }
 0x8f7   : > { %v1398_v52 = vadd.f32 %v2827_v49, %v1394_v51 }
 0x8f9   : > { %v1399_v53 = vpack.c.bf16 %v1398_v52, %v1398_v52 }
 0x8fb   : > { %2576 = vmatmul.msk.bf16.vlgmr.msrb.gmra.mxu3 %vm680_vm3, %v1399_v53 }
 0x97e   : > { %v1432_v57 = vpop.f32.mrf.mxu3 }
 0x97f   : > { %v1433_v58 = vadd.f32 %v2828_v56, %v1432_v57 }
 0x981   : > { %v1436_v59 = vmax.f32 %v1433_v58, 0.0 }
 0x983   : > { %v1437_v60 = vpack.c.bf16 %v1436_v59, %v1436_v59 }
 0x985   : > { %2593 = vmatmul.msk.bf16.vlgmr.msrb.gmra.mxu2 %vm1474_vm12, %v1437_v60 }
 0x986   : > { %v1434_v61 = vpop.f32.mrf.mxu3 }
 0xa08   : > { %v1487_v63 = vpop.f32.mrf.mxu2 }
 0xa09   : > { %v1488_v0 = vadd.f32 %v2829_v62, %v1487_v63 }
 0xa0b   : > { %v1491_v2 = vadd.f32 %v1488_v0, %v1398_v52 }
 0xa0d   : > { %v1494_v3 = vsel %vm680_vm3, %v1491_v2, 0.0 }
 0xa0e   : > { %1495 = vadd.xlane.f32.xlu2 %v1494_v3 }
 0xa10   : > { %v1489_v4 = vpop.f32.mrf.mxu2 }
 0xa81   : > { %v1496_v5 = vpop.xlane.xlu2 %1495 }
 0xa82   : > { %v1497_v6 = vmul.f32 %v1496_v5, %v3242_v29 }
 0xa84   : > { %v1498_v7 = vsub.f32 %v1491_v2, %v1497_v6 }
 0xa86   : > { %v1499_v8 = vmul.f32 %v1498_v7, %v1498_v7 }
 0xa88   : > { %v1500_v9 = vsel %vm680_vm3, %v1499_v8, 0.0 }
 0xa89   : > { %1501 = vadd.xlane.f32.xlu1 %v1500_v9 }
 0xafc   : > { %v1502_v12 = vpop.xlane.xlu1 %1501 }
 0xafd   : > { %v1503_v14 = vmul.f32 %v1502_v12, %v3242_v29 }
 0xaff   : > { %v1504_v15 = vadd.f32 1e-05, %v1503_v14 }
 0xb01   : > { %2861 = vrsqrt.f32 %v1504_v15  ;;  %vm1511_vm14 = vweird.f32 %v1504_v15 }
 0xb07   : > { %v2862_v16 = vpop.eup %2861 }
 0xb08   : > { %v1506_v17 = vmul.f32 %v2862_v16, %v1504_v15  ;;  %vm1512_vm13 = vweird.f32 %v2862_v16 }
 0xb09   : > { %vm1513_vm15 = vmor %vm1511_vm14, %vm1512_vm13 }
 0xb0a   : > { %v1507_v18 = vmul.f32 %v2862_v16, %v1506_v17 }
 0xb0c   : > { %v1508_v19 = vmul.f32 0.5, %v1507_v18 }
 0xb0e   : > { %v1509_v20 = vsub.f32 1.5, %v1508_v19 }
 0xb10   : > { %v1510_v22 = vmul.f32 %v2862_v16, %v1509_v20 }
 0xb12   : > { %v1514_v24 = vsel %vm1513_vm15, %v2862_v16, %v1510_v22 }
 0xb13   : > { %v1515_v26 = vmul.f32 %v1514_v24, %v1498_v7 }
 0xb15   : > { %v1519_v27 = vmul.f32 %v2830_v23, %v1515_v26 }
 0xb17   : > { %v3295_v28 = vadd.f32 %v2831_v25, %v1519_v27 }
 0xb19   : > { %v1524_v30 = vpack.c.bf16 %v3295_v28, %v3295_v28 }
 0xb1b   : > { %2607 = vmatmul.msk.bf16.vlgmr.msrb.gmra.mxu1 %vm680_vm3, %v1524_v30 }
 0xb98   : > { %v1559_v32 = vpop.f32.mrf.mxu1 }
 0xb99   : > { %v1560_v33 = vadd.f32 %v2832_v31, %v1559_v32 }
 0xb9b   : > { %v1563_v21 = vpack.c.bf16 %v1560_v33, %v1560_v33 }
 0xb9d   : > { %1569 = vrot.lane.b32.xlu2 %v1563_v21, %s2949_s24  ;;  %1565 = vrot.lane.b32.xlu0 %v1563_v21, %s2952_s19  ;;  %v1571_v43 = vunpack.c.l.b16 %v1563_v21  ;;  %s3530_s24 = smov 64   ;;  %s3533_s19 = smov 8  }
 0xb9e   : > { %1567 = vrot.lane.b32.xlu1 %v1563_v21, %s2950_s16  ;;  %s3531_s16 = smov 24  }
 0xb9f   : > { %v1575_v45 = vpack.c.b16 %v1571_v43, %v1571_v43 }
 0xba0   : > { %v1561_v34 = vpop.f32.mrf.mxu1 }
 0xbf7   : > { %v1570_v40 = vpop.permute.xlu2 %1569 }
 0xbf8   : > { %v1574_v42 = vunpack.c.l.b16 %v1570_v40 }
 0xbfa   : > { %v1578_v44 = vpack.c.b16 %v1574_v42, %v1574_v42 }
 0xc0f   : > { %v1566_v35 = vpop.permute.xlu0 %1565 }
 0xc10   : > { %v1572_v36 = vunpack.c.l.b16 %v1566_v35  ;;  %v1568_v37 = vpop.permute.xlu1 %1567 }
 0xc11   : > { %v1573_v38 = vunpack.c.l.b16 %v1568_v37 }
 0xc12   : > { %v1576_v39 = vpack.c.b16 %v1572_v36, %v1572_v36 }
 0xc13   : > { %v1577_v41 = vpack.c.b16 %v1573_v38, %v1573_v38 }
 0xc14   : > { %1581 = vrot.lane.b32.xlu1 %v1576_v39, %s2951_s27 }
 0xc15   : > { %1583 = vrot.lane.b32.xlu0 %v1577_v41, %s2951_s27 }
 0xc1c   : > { %1585 = vrot.lane.b32.xlu1 %v1578_v44, %s2951_s27 }
 0xc1d   : > { %1579 = vrot.lane.b32.xlu0 %v1575_v45, %s2951_s27  ;;  %s3532_s27 = smov 16  }
 0xc24   : > { %1783 = vrot.lane.b32.xlu1 %v1577_v41, %s3530_s24 }
 0xc86   : > { %v1582_v46 = vpop.permute.xlu1 %1581 }
 0xc87   : > { %v1584_v47 = vpop.permute.xlu0 %1583 }
 0xc88   : > { %2798 = vxpose.binary.xlu2.c.b16.start.end [1/2] (short) (narrow) %v1582_v46, %v1584_v47, 16 }
 0xc8e   : > { %v1586_v48 = vpop.permute.xlu1 %1585 }
 0xc8f   : > { %v1580_v49 = vpop.permute.xlu0 %1579 }
 0xc90   : > { %2801 = vxpose.binary.xlu0.c.b16.start.end [1/2] (short) (narrow) %v1586_v48, %v1580_v49, 16 }
 0xc96   : > { %v1784_v7 = vpop.permute.xlu1 %1783 }
 0xd29   : > { %v2799_v50 = vpop.trf.xlu2 }
 0xd2a   : > { %v1697_v51 = vsel %vm793_vm4, %v2799_v50, 0 }
 0xd2b   : > { %1706 = vmatpush.bf16.msra.mxu2 %v1697_v51 }
 0xd2e   : > { %2610 = vmatmul.msk.bf16.vlgmr.msra.gmra.mxu2 %vm789_vm5, %v1568_v37 }
 0xd31   : > { %v2800_v52 = vpop.trf.xlu2 }
 0xd32   : > { %v1678_v53 = vsel %vm793_vm4, %v2800_v52, 0 }
 0xd33   : > { %1687 = vmatpush.bf16.msra.mxu3 %v1678_v53 }
 0xd36   : > { %2609 = vmatmul.msk.bf16.vlgmr.msra.gmra.mxu3 %vm789_vm5, %v1566_v35 }
 0xd3c   : > { %v2802_v54 = vpop.trf.xlu0 }
 0xd3d   : > { %v1659_v55 = vsel %vm793_vm4, %v2802_v54, 0 }
 0xd3e   : > { %1668 = vmatpush.bf16.msrb.mxu0 %v1659_v55 }
 0xd41   : > { %2608 = vmatmul.msk.bf16.vlgmr.msrb.gmra.mxu0 %vm789_vm5, %v1563_v21 }
 0xd44   : > { %v2803_v56 = vpop.trf.xlu0 }
 0xd45   : > { %v1716_v57 = vsel %vm793_vm4, %v2803_v56, 0 }
 0xd46   : > { %1725 = vmatpush.bf16.msra.mxu1 %v1716_v57 }
 0xd49   : > { %2611 = vmatmul.msk.bf16.vlgmr.msra.gmra.mxu1 %vm789_vm5, %v1570_v40 }
 0xdb1   : > { %v1708_v58 = vpop.f32.mrf.mxu2 }
 0xdb2   : > { %v1737_v6 = vsel %vm789_vm5, %v1708_v58, -inf }
 0xdb9   : > { %v1689_v59 = vpop.f32.mrf.mxu3  ;;  %v1710_v60 = vpop.f32.mrf.mxu2 }
 0xdba   : > { %v1734_v61 = vsel %vm789_vm5, %v1689_v59, -inf }
 0xdbb   : > { %1735 = vmax.xlane.f32.xlu0 %v1734_v61 }
 0xdbe   : > { %v1670_v62 = vpop.f32.mrf.mxu0 }
 0xdbf   : > { %v1731_v63 = vsel %vm789_vm5, %v1670_v62, -inf }
 0xdc0   : > { %1732 = vmax.xlane.f32.xlu2 %v1731_v63 }
 0xdc1   : > { %v1691_v0 = vpop.f32.mrf.mxu3 }
 0xdc6   : > { %v1672_v2 = vpop.f32.mrf.mxu0  ;;  %v1727_v3 = vpop.f32.mrf.mxu1 }
 0xdc7   : > { %v1740_v4 = vsel %vm789_vm5, %v1727_v3, -inf }
 0xdc8   : > { %1741 = vmax.xlane.f32.xlu1 %v1740_v4 }
 0xdce   : > { %v1729_v5 = vpop.f32.mrf.mxu1 }
 0xdcf   : > { %1779 = vrot.lane.b32.xlu0 %v1575_v45, %s3530_s24 }
 0xdd0   : > { %1738 = vmax.xlane.f32.xlu1 %v1737_v6 }
 0xdd8   : > { %1785 = vrot.lane.b32.xlu2 %v1578_v44, %s3530_s24 }
 0xde9   : > { %1781 = vrot.lane.b32.xlu1 %v1576_v39, %s3530_s24 }
 0xe2e   : > { %v1736_v17 = vpop.xlane.xlu0 %1735 }
 0xe2f   : > { %v1744_v22 = vsub.f32 %v1689_v59, %v1736_v17 }
 0xe31   : > { %v1749_v25 = vmul.f32 1.442695, %v1744_v22 }
 0xe33   : > { %v1733_v8 = vpop.xlane.xlu2 %1732 }
 0xe34   : > { %v1743_v9 = vsub.f32 %v1670_v62, %v1733_v8 }
 0xe36   : > { %v1747_v10 = vmul.f32 1.442695, %v1743_v9 }
 0xe38   : > { %2863 = vpow2.f32 %v1747_v10 }
 0xe3b   : > { %v1742_v11 = vpop.xlane.xlu1 %1741  ;;  %v1786_v32 = vpop.permute.xlu2 %1785 }
 0xe3c   : > { %v1746_v12 = vsub.f32 %v1727_v3, %v1742_v11 }
 0xe3e   : > { %v2864_v14 = vpop.eup %2863  ;;  %v1753_v15 = vmul.f32 1.442695, %v1746_v12 }
 0xe3f   : > { %v1755_v16 = vsel %vm789_vm5, %v2864_v14, 0.0 }
 0xe40   : > { %2865 = vpow2.f32 %v1753_v15  ;;  %1756 = vadd.xlane.f32.xlu0 %v1755_v16 }
 0xe41   : > { %v1780_v33 = vpop.permute.xlu0 %1779 }
 0xe43   : > { %v1739_v18 = vpop.xlane.xlu1 %1738 }
 0xe44   : > { %v1745_v19 = vsub.f32 %v1708_v58, %v1739_v18 }
 0xe46   : > { %v2866_v20 = vpop.eup %2865  ;;  %v1751_v23 = vmul.f32 1.442695, %v1745_v19 }
 0xe47   : > { %v1764_v24 = vsel %vm789_vm5, %v2866_v20, 0.0 }
 0xe48   : > { %2867 = vpow2.f32 %v1751_v23  ;;  %1765 = vadd.xlane.f32.xlu2 %v1764_v24 }
 0xe49   : > { %2869 = vpow2.f32 %v1749_v25 }
 0xe4e   : > { %v2868_v26 = vpop.eup %2867 }
 0xe4f   : > { %v1761_v27 = vsel %vm789_vm5, %v2868_v26, 0.0  ;;  %v2870_v30 = vpop.eup %2869 }
 0xe50   : > { %1762 = vadd.xlane.f32.xlu1 %v1761_v27  ;;  %v1758_v31 = vsel %vm789_vm5, %v2870_v30, 0.0 }
 0xe58   : > { %1759 = vadd.xlane.f32.xlu1 %v1758_v31 }
 0xe5b   : > { %v1782_v21 = vpop.permute.xlu1 %1781 }
 0xe69   : > { %2807 = vxpose.binary.xlu0.c.b16.start.end [1/2] (short) (narrow) %v1786_v32, %v1780_v33, 16 }
 0xe92   : > { %2804 = vxpose.binary.xlu1.c.b16.start.end [1/2] (short) (narrow) %v1782_v21, %v1784_v7, 16 }
 0xeb3   : > { %v1757_v34 = vpop.xlane.xlu0 %1756 }
 0xeb4   : > { %2871 = vrcp.f32 %v1757_v34 }
 0xeba   : > { %v2872_v35 = vpop.eup %2871 }
 0xebb   : > { %v1766_v36 = vpop.xlane.xlu2 %1765  ;;  %v1771_v37 = vmul.f32 %v2872_v35, %v2864_v14 }
 0xebc   : > { %2873 = vrcp.f32 %v1766_v36 }
 0xebd   : > { %v1775_v38 = vpack.c.bf16 %v1771_v37, %v1771_v37 }
 0xebf   : > { %v1859_v39 = vsel %vm789_vm5, %v1775_v38, 0 }
 0xec0   : > { %1868 = vmatpush.bf16.xpose.msra.mxu0 %v1859_v39 }
 0xec2   : > { %v2874_v40 = vpop.eup %2873 }
 0xec3   : > { %v1763_v41 = vpop.xlane.xlu1 %1762  ;;  %v1774_v42 = vmul.f32 %v2874_v40, %v2866_v20 }
 0xec4   : > { %2875 = vrcp.f32 %v1763_v41 }
 0xec5   : > { %v1778_v43 = vpack.c.bf16 %v1774_v42, %v1774_v42 }
 0xec7   : > { %v1916_v44 = vsel %vm789_vm5, %v1778_v43, 0 }
 0xec8   : > { %1925 = vmatpush.bf16.xpose.msrb.mxu1 %v1916_v44 }
 0xeca   : > { %v2876_v45 = vpop.eup %2875 }
 0xecb   : > { %v1760_v46 = vpop.xlane.xlu1 %1759  ;;  %v1773_v47 = vmul.f32 %v2876_v45, %v2868_v26 }
 0xecc   : > { %2877 = vrcp.f32 %v1760_v46 }
 0xecd   : > { %v1777_v48 = vpack.c.bf16 %v1773_v47, %v1773_v47 }
 0xecf   : > { %v1897_v49 = vsel %vm789_vm5, %v1777_v48, 0 }
 0xed0   : > { %1906 = vmatpush.bf16.xpose.msrb.mxu2 %v1897_v49 }
 0xed2   : > { %v2878_v50 = vpop.eup %2877 }
 0xed3   : > { %v1772_v51 = vmul.f32 %v2878_v50, %v2870_v30 }
 0xed5   : > { %v1776_v52 = vpack.c.bf16 %v1772_v51, %v1772_v51 }
 0xed7   : > { %v1878_v53 = vsel %vm789_vm5, %v1776_v52, 0 }
 0xed8   : > { %1887 = vmatpush.bf16.xpose.msrb.mxu3 %v1878_v53 }
 0xf15   : > { %v2808_v54 = vpop.trf.xlu0 }
 0xf16   : > { %2612 = vmatmul.msk.bf16.vlgmr.msra.gmra.mxu0 %vm789_vm5, %v2808_v54 }
 0xf1d   : > { %v2809_v55 = vpop.trf.xlu0 }
 0xf1e   : > { %2615 = vmatmul.msk.bf16.vlgmr.msrb.gmra.mxu1 %vm789_vm5, %v2809_v55 }
 0xf3e   : > { %v2805_v56 = vpop.trf.xlu1 }
 0xf3f   : > { %2614 = vmatmul.msk.bf16.vlgmr.msrb.gmra.mxu2 %vm789_vm5, %v2805_v56 }
 0xf46   : > { %v2806_v57 = vpop.trf.xlu1 }
 0xf47   : > { %2613 = vmatmul.msk.bf16.vlgmr.msrb.gmra.mxu3 %vm789_vm5, %v2806_v57 }
 0xf93   : > { %v1870_v58 = vpop.f32.mrf.mxu0 }
 0xf9b   : > { %v1927_v59 = vpop.f32.mrf.mxu1  ;;  %v1872_v60 = vpop.f32.mrf.mxu0 }
 0xfa3   : > { %v1929_v61 = vpop.f32.mrf.mxu1 }
 0xfc2   : > { %v1908_v62 = vpop.f32.mrf.mxu2 }
 0xfc3   : > { %v2810_v63 = vpack.i.bf16 %v1870_v58, %v1908_v62 }
 0xfc5   : > { %2811 = vxpose.xlu2.b32.start.end [1/1] (short) (narrow) %v2810_v63, 8 }
 0xfca   : > { %v1889_v0 = vpop.f32.mrf.mxu3  ;;  %v1910_v2 = vpop.f32.mrf.mxu2 }
 0xfcb   : > { %v2817_v3 = vpack.i.bf16 %v1889_v0, %v1927_v59 }
 0xfcd   : > { %2818 = vxpose.xlu1.b32.start.end [1/1] (short) (narrow) %v2817_v3, 8 }
 0xfd2   : > { %v1891_v4 = vpop.f32.mrf.mxu3 }
0x105e   : > { %v2812_v5 = vpop.trf.xlu2 }
0x105f   : > { %v2816_v6 = vunpack.i.h.bf16 %v2812_v5  ;;  %v2813_v7 = vunpack.i.l.bf16 %v2812_v5 }
0x1061   : > { %v2061_v8 = vrot.slane %v2816_v6, 4  ;;  %v2059_v9 = vrot.slane %v2813_v7, 4 }
0x1063   : > { %v2060_v10 = vsel %vm1196_vm6, %v2059_v9, %v2816_v6  ;;  %v2062_v11 = vsel %vm1196_vm6, %v2813_v7, %v2061_v8 }
0x1064   : > { %v2066_v16 = vperm.slane %v2060_v10, %v3180_v1  ;;  %v2070_v17 = vperm.slane %v2062_v11, %v3180_v1 }
0x1066   : > { %v2085_v23 = vrot.slane %v2066_v16, 4  ;;  %v2097_v24 = vrot.slane %v2070_v17, 4 }
0x1071   : > { %v2819_v12 = vpop.trf.xlu1 }
0x1072   : > { %v2823_v14 = vunpack.i.h.bf16 %v2819_v12  ;;  %v2820_v15 = vunpack.i.l.bf16 %v2819_v12  ;;  %v2707_v12 = vld [vmem:[%s3488_s5 + $0x10] sm:$0xff] }
0x1074   : > { %v2073_v18 = vrot.slane %v2823_v14, 4  ;;  %v2071_v19 = vrot.slane %v2820_v15, 4 }
0x1076   : > { %v2072_v20 = vsel %vm1196_vm6, %v2071_v19, %v2823_v14  ;;  %v2074_v22 = vsel %vm1196_vm6, %v2820_v15, %v2073_v18 }
0x1077   : > { %v2078_v25 = vperm.slane %v2072_v20, %v3180_v1  ;;  %v2082_v26 = vperm.slane %v2074_v22, %v3180_v1  ;;  %v2833_v22 = vld [vmem:[%s3489_s6 + $0x1] ss:$0 sm:$0xff] }
0x1079   : > { %v2083_v27 = vrot.slane %v2078_v25, 4  ;;  %v2086_v30 = vsel %vm1196_vm6, %v2078_v25, %v2085_v23  ;;  %v2095_v31 = vrot.slane %v2082_v26, 4  ;;  %v2098_v32 = vsel %vm1196_vm6, %v2082_v26, %v2097_v24 }
0x107a   : > { %v2094_v33 = vperm.slane %v2086_v30, %v3186_v13  ;;  %v2106_v21 = vperm.slane %v2098_v32, %v3186_v13 }
0x107b   : > { %v2084_v34 = vsel %vm1196_vm6, %v2083_v27, %v2066_v16  ;;  %v2096_v35 = vsel %vm1196_vm6, %v2095_v31, %v2070_v17 }
0x107c   : > { %v2090_v36 = vperm.slane %v2084_v34, %v3186_v13  ;;  %v2109_v37 = vrot.slane %v2094_v33, 4  ;;  %v2102_v38 = vperm.slane %v2096_v35, %v3186_v13  ;;  %v2113_v39 = vrot.slane %v2106_v21, 4  ;;  %v2710_v34 = vld [vmem:[%s3492_s9 + $0x18] sm:$0xff] }
0x107d   : > { %2290 = vmatpush.bf16.msra.mxu3 %v2710_v34  ;;  %v2714_v35 = vld [vmem:[%s3494_s11 + $0x38] sm:$0xff] }
0x107e   : > { %v2107_v40 = vrot.slane %v2090_v36, 4  ;;  %v2110_v41 = vsel %vm1196_vm6, 0.0, %v2109_v37  ;;  %v2111_v42 = vrot.slane %v2102_v38, 4  ;;  %v2114_v43 = vsel %vm1196_vm6, 0.0, %v2113_v39  ;;  %2344 = vmatpush.bf16.msra.mxu2 %v2714_v35 }
0x107f   : > { %v2120_v44 = vrot.slane %v2110_v41, 4  ;;  %v2115_v45 = vsel %vm1196_vm6, %v2109_v37, %v2090_v36  ;;  %v2126_v46 = vsel %vm1196_vm6, %v2113_v39, %v2102_v38  ;;  %v2131_v47 = vrot.slane %v2114_v43, 4  ;;  %v2713_v38 = vld [vmem:[%s3494_s11 + $0x30] sm:$0xff] }
0x1080   : > { %v2108_v48 = vsel %vm1196_vm6, 0.0, %v2107_v40  ;;  %v2112_v49 = vsel %vm1196_vm6, 0.0, %v2111_v42  ;;  %v2119_v50 = vperm.slane %v2115_v45, %v3180_v1  ;;  %v2130_v51 = vperm.slane %v2126_v46, %v3180_v1  ;;  %v2834_v46 = vld [vmem:[%s3490_s7 + $0x1] ss:$0 sm:$0xff] }
0x1081   : > { %v2121_v52 = vsel %vm1196_vm6, %v2120_v44, %v2108_v48  ;;  %v2132_v53 = vsel %vm1196_vm6, %v2131_v47, %v2112_v49  ;;  %v2835_v48 = vld [vmem:[%s3491_s8 + $0x1] ss:$0 sm:$0xff] }
0x1082   : > { %v2125_v54 = vperm.slane %v2121_v52, %v3180_v1  ;;  %v2136_v55 = vperm.slane %v2132_v53, %v3180_v1  ;;  %v2139_v56 = vrot.slane %v2119_v50, 4  ;;  %v2151_v57 = vrot.slane %v2130_v51, 4  ;;  %2345 = vmatpush.bf16.msra.mxu2 %v2713_v38  ;;  %v2712_v53 = vld [vmem:[%s3494_s11 + $0x28] sm:$0xff] }
0x1084   : > { %v2137_v58 = vrot.slane %v2125_v54, 4  ;;  %v2149_v59 = vrot.slane %v2136_v55, 4  ;;  %v2140_v60 = vsel %vm1196_vm6, %v2125_v54, %v2139_v56  ;;  %v2152_v61 = vsel %vm1196_vm6, %v2136_v55, %v2151_v57  ;;  %v2711_v54 = vld [vmem:[%s3494_s11 + $0x20] sm:$0xff] }
0x1085   : > { %v2148_v62 = vperm.slane %v2140_v60, %v3186_v13  ;;  %v2160_v63 = vperm.slane %v2152_v61, %v3186_v13  ;;  %v2836_v55 = vld [vmem:[%s3493_s10 + $0x1] ss:$0 sm:$0xff] }
0x1086   : > { %v2138_v0 = vsel %vm1196_vm6, %v2137_v58, %v2119_v50  ;;  %v2150_v2 = vsel %vm1196_vm6, %v2149_v59, %v2130_v51  ;;  %2346 = vmatpush.bf16.msra.mxu2 %v2712_v53  ;;  %v2837_v61 = vld [vmem:[%s3495_s12 + $0x1] ss:$0 sm:$0xff] }
0x1087   : > { %v2144_v3 = vperm.slane %v2138_v0, %v3186_v13  ;;  %v2156_v1 = vperm.slane %v2150_v2, %v3186_v13  ;;  %v2167_v4 = vrot.slane %v2148_v62, 4  ;;  %v2165_v5 = vrot.slane %v2160_v63, 4  ;;  %v2708_v13 = vld [vmem:[%s3488_s5 + $0x18] sm:$0xff] }
0x1088   : > { %2216 = vmatpush.bf16.msrb.mxu0 %v2708_v13 }
0x1089   : > { %v2161_v6 = vrot.slane %v2156_v1, 4  ;;  %v2163_v7 = vrot.slane %v2144_v3, 4  ;;  %v2168_v8 = vsel %vm1196_vm6, %v2160_v63, %v2167_v4  ;;  %v2166_v9 = vsel %vm1196_vm6, %v2165_v5, %v2148_v62 }
0x108a   : > { %2178 = vrot.lane.b32.xlu1 %v2168_v8, %s3531_s16  ;;  %2174 = vrot.lane.b32.xlu2 %v2166_v9, %s3532_s27  ;;  %v2716_v8 = vld [vmem:[%s3498_s15 + $0x8] sm:$0xff]  ;;  %v2715_v9 = vld [vmem:[%s3498_s15] sm:$0xff]  ;;  %s537_s27 = sand.u32 1, %s2937_s25  }
0x108b   : > { %v2164_v10 = vsel %vm1196_vm6, %v2156_v1, %v2163_v7  ;;  %v2162_v11 = vsel %vm1196_vm6, %v2161_v6, %v2144_v3  ;;  %2347 = vmatpush.bf16.msra.mxu2 %v2711_v54  ;;  %2418 = vmatpush.bf16.msra.mxu1 %v2716_v8  ;;  %s2505_s30 = sshll.u32 %s537_s27, 3  ;;  %s2427_s2 = scalar_lea.sflag [#allocation3], %s537_s27 }
0x108c   : > { %2170 = vrot.lane.b32.xlu0 %v2164_v10, %s3533_s19  ;;  %2217 = vmatpush.bf16.msrb.mxu0 %v2707_v12  ;;  %s2684_s19 = sshll.u32 %s3071_s28, 3  ;;  %s539_s0 = scalar_lea.vmem [#allocation2], %s2505_s30 }
0x108d   : > { %s2437_s22 = scalar_lea.hbm %s3500_s17, %s2684_s19  ;;  %s2439_s24 = sshll.u32 %s539_s0, 4  ;;  %s2440_s24 = int_to_ptr.vmem [resolvable:$true] %s2439_s24 }
0x108e   : > { %s2441_s16 = sshll.u32 %s2437_s22, 4  ;;  %s2442_s16 = int_to_ptr.hbm [resolvable:$true] %s2441_s16 }
0x108f   : > { %2419 = vmatpush.bf16.msra.mxu1 %v2715_v9  ;;  %s2897_s28 = sshra.s32 %s2442_s16, 4  ;;  %s2898_s28 = int_to_ptr.hbm [resolvable:$true] %s2897_s28 }
0x1090   : > { %s2899_s3 = scalar_lea.hbm %s2898_s28, 8  ;;  %p2904_p0 = scmp.lt.s32.totalorder %s2898_s28, %s3500_s17 }
0x1091   : > { %p2900_p11 = scmp.ne.s32.totalorder %s2898_s28, %s2899_s3  ;;  %p2905_p1 = scmp.lt.s32.totalorder %s2903_s21, %s2899_s3 }
0x1093   : > { %p2901_p12 = pnand %p2900_p11, %p3088_p5  ;;  %p2906_p2 = por %p2905_p1, %p2904_p0 }
0x1095   : > { %p2902_p13 = pneg %p2901_p12 }
0x1097   : > { %p2907_p3 = pnand %p2906_p2, %p2902_p13 }
0x10e4   : > { %v2175_v15 = vpop.permute.xlu2 %2174 }
0x10fc   : > { %v2179_v17 = vpop.permute.xlu1 %2178 }
0x10fe   : > { %v2171_v14 = vpop.permute.xlu0 %2170 }
0x10ff   : > { %v2181_v16 = vsel %vm789_vm5, %v2162_v11, %v2171_v14 }
0x1100   : > { %v2182_v18 = vsel %vm635_vm2, %v2181_v16, %v2175_v15 }
0x1101   : > { %v2183_v19 = vsel %vm1320_vm7, %v2182_v18, %v2179_v17 }
0x1102   : > { %v2184_v20 = vpack.c.bf16 %v2183_v19, %v2183_v19  ;;  %v2838_v19 = vld [vmem:[%s3496_s13 + $0x1] ss:$0 sm:$0xff] }
0x1104   : > { %2629 = vmatmul.msk.bf16.vlgmr.msrb.gmra.mxu0 %vm680_vm3, %v2184_v20 }
0x1181   : > { %v2219_v23 = vpop.f32.mrf.mxu0 }
0x1182   : > { %v2220_v24 = vadd.f32 %v2833_v22, %v2219_v23 }
0x1184   : > { %v2223_v25 = vadd.f32 %v2220_v24, %v3295_v28  ;;  %v2709_v28 = vld [vmem:[%s3492_s9 + $0x10] sm:$0xff] }
0x1185   : > { %2291 = vmatpush.bf16.msra.mxu3 %v2709_v28 }
0x1186   : > { %v2228_v26 = vsel %vm680_vm3, %v2223_v25, 0.0 }
0x1187   : > { %2229 = vadd.xlane.f32.xlu1 %v2228_v26  ;;  %v2840_v26 = vld [vmem:[%s3534_s29] ss:$0 sm:$0xff] }
0x1189   : > { %v2221_v27 = vpop.f32.mrf.mxu0 }
0x11fa   : > { %v2230_v30 = vpop.xlane.xlu1 %2229 }
0x11fb   : > { %v2231_v31 = vmul.f32 %v2230_v30, %v3242_v29 }
0x11fd   : > { %v2232_v32 = vsub.f32 %v2223_v25, %v2231_v31 }
0x11ff   : > { %v2233_v33 = vmul.f32 %v2232_v32, %v2232_v32 }
0x1201   : > { %v2234_v21 = vsel %vm680_vm3, %v2233_v33, 0.0 }
0x1202   : > { %2235 = vadd.xlane.f32.xlu2 %v2234_v21 }
0x1275   : > { %v2236_v36 = vpop.xlane.xlu2 %2235 }
0x1276   : > { %v2237_v37 = vmul.f32 %v2236_v36, %v3242_v29 }
0x1278   : > { %v2238_v39 = vadd.f32 1e-05, %v2237_v37 }
0x127a   : > { %2879 = vrsqrt.f32 %v2238_v39  ;;  %vm2245_vm1 = vweird.f32 %v2238_v39 }
0x1280   : > { %v2880_v40 = vpop.eup %2879 }
0x1281   : > { %v2240_v41 = vmul.f32 %v2880_v40, %v2238_v39  ;;  %vm2246_vm0 = vweird.f32 %v2880_v40 }
0x1282   : > { %vm2247_vm2 = vmor %vm2245_vm1, %vm2246_vm0 }
0x1283   : > { %v2241_v42 = vmul.f32 %v2880_v40, %v2240_v41 }
0x1285   : > { %v2242_v43 = vmul.f32 0.5, %v2241_v42 }
0x1287   : > { %v2243_v44 = vsub.f32 1.5, %v2242_v43 }
0x1289   : > { %v2244_v45 = vmul.f32 %v2880_v40, %v2243_v44 }
0x128b   : > { %v2248_v47 = vsel %vm2247_vm2, %v2880_v40, %v2244_v45 }
0x128c   : > { %v2249_v49 = vmul.f32 %v2248_v47, %v2232_v32 }
0x128e   : > { %v2253_v50 = vmul.f32 %v2834_v46, %v2249_v49 }
0x1290   : > { %v2257_v51 = vadd.f32 %v2835_v48, %v2253_v50 }
0x1292   : > { %v2258_v52 = vpack.c.bf16 %v2257_v51, %v2257_v51 }
0x1294   : > { %2645 = vmatmul.msk.bf16.vlgmr.msra.gmra.mxu3 %vm680_vm3, %v2258_v52 }
0x1317   : > { %v2293_v56 = vpop.f32.mrf.mxu3 }
0x1318   : > { %v2294_v57 = vadd.f32 %v2836_v55, %v2293_v56 }
0x131a   : > { %v2297_v58 = vmax.f32 %v2294_v57, 0.0 }
0x131c   : > { %v2298_v59 = vpack.c.bf16 %v2297_v58, %v2297_v58 }
0x131e   : > { %2671 = vmatmul.msk.bf16.vlgmr.msra.gmra.mxu2 %vm1474_vm12, %v2298_v59 }
0x131f   : > { %v2295_v60 = vpop.f32.mrf.mxu3 }
0x13a1   : > { %v2349_v62 = vpop.f32.mrf.mxu2 }
0x13a2   : > { %v2350_v63 = vadd.f32 %v2837_v61, %v2349_v62 }
0x13a4   : > { %v2353_v0 = vadd.f32 %v2350_v63, %v2257_v51 }
0x13a6   : > { %v2358_v2 = vsel %vm680_vm3, %v2353_v0, 0.0 }
0x13a7   : > { %2359 = vadd.xlane.f32.xlu0 %v2358_v2 }
0x13a9   : > { %v2351_v3 = vpop.f32.mrf.mxu2 }
0x141a   : > { %v2360_v1 = vpop.xlane.xlu0 %2359 }
0x141b   : > { %v2361_v4 = vmul.f32 %v2360_v1, %v3242_v29 }
0x141d   : > { %v2362_v5 = vsub.f32 %v2353_v0, %v2361_v4 }
0x141f   : > { %v2363_v6 = vmul.f32 %v2362_v5, %v2362_v5 }
0x1421   : > { %v2364_v7 = vsel %vm680_vm3, %v2363_v6, 0.0 }
0x1422   : > { %2365 = vadd.xlane.f32.xlu1 %v2364_v7 }
0x1495   : > { %v2366_v10 = vpop.xlane.xlu1 %2365 }
0x1496   : > { %v2367_v11 = vmul.f32 %v2366_v10, %v3242_v29  ;;  %v2839_v29 = vld [vmem:[%s3497_s14 + $0x1] ss:$0 sm:$0xff] }
0x1498   : > { %v2368_v13 = vadd.f32 1e-05, %v2367_v11 }
0x149a   : > { %2881 = vrsqrt.f32 %v2368_v13  ;;  %vm2375_vm5 = vweird.f32 %v2368_v13 }
0x14a0   : > { %v2882_v12 = vpop.eup %2881 }
0x14a1   : > { %v2370_v14 = vmul.f32 %v2882_v12, %v2368_v13  ;;  %vm2376_vm4 = vweird.f32 %v2882_v12 }
0x14a2   : > { %vm2377_vm6 = vmor %vm2375_vm5, %vm2376_vm4 }
0x14a3   : > { %v2371_v15 = vmul.f32 %v2882_v12, %v2370_v14 }
0x14a5   : > { %v2372_v16 = vmul.f32 0.5, %v2371_v15 }
0x14a7   : > { %v2373_v17 = vsub.f32 1.5, %v2372_v16 }
0x14a9   : > { %v2374_v18 = vmul.f32 %v2882_v12, %v2373_v17 }
0x14ab   : > { %v2378_v20 = vsel %vm2377_vm6, %v2882_v12, %v2374_v18 }
0x14ac   : > { %v2379_v22 = vmul.f32 %v2378_v20, %v2362_v5 }
0x14ae   : > { %v2383_v23 = vmul.f32 %v2838_v19, %v2379_v22 }
0x14b0   : > { %v2387_v24 = vadd.f32 %v2839_v29, %v2383_v23 }
0x14b2   : > { %v2388_v25 = vpack.c.bf16 %v2387_v24, %v2387_v24 }
0x14b4   : > { %2682 = vmatmul.msk.bf16.vlgmr.msra.gmra.mxu1 %vm680_vm3, %v2388_v25 }
0x1531   : > { %v2421_v27 = vpop.f32.mrf.mxu1 }
0x1532   : > { %v2422_v30 = vadd.f32 %v2840_v26, %v2421_v27 }
0x1534   : > { %2425 = vst [vmem:[%s539_s0] sm:$0xff] %v2422_v30 }
0x1535   : > { %2910 = shalt.err (!%p2907_p3)
}
0x1536   : > { %2721 = dma.vmem_to_hbm [thread:$0]  (%p3088_p5), %s2440_s24, 128, %s2442_s16, %s2427_s2  }
0x1539   : > { %v2423_v31 = vpop.f32.mrf.mxu1 }
0x153a PF: > { %s3535_s27 = sld [smem:[#allocation7_spill]] }
0x153b   : > { %s3536_s22 = sld [smem:[#allocation5_spill]] }
0x1540   : > { %p2727_p4 = scmp.ge.s32.totalorder %s3535_s27, 2 }
0x1541   : > { %s2453_s29 = sand.u32 1, %s3536_s22  }
0x1542   : > { %p2724_p7 = pnand %p2727_p4, %p3092_p6  ;;  %s2454_s0 = scalar_lea.sflag [#allocation3], %s2453_s29 }
0x1544   : > { %p2725_p8 = pneg %p2724_p7 }
0x1546   : > { %2928 = dma.done.wait (%p2725_p8), %s2454_s0, 128  }
0x1547   : > { %2930 = vsyncadd (%p2725_p8), %s2454_s0, 4294967168  ;;  %s3538_s27 = sld [smem:[#allocation8_spill]]  ;;  %s3541_s24 = smov %s2937_s25 }
0x1548   : > { %s3539_s3 = sld [smem:[#allocation6_spill]] }
0x1549   : > { %s3540_s26 = sld [smem:[#allocation9_spill]] }
0x154d   : > { %p27_p9 = scmp.ge.s32.totalorder %s3538_s27, 4  }
0x154e   : > { %s3542_s25 = smov %s3539_s3 }
0x154f   :  { %29 = sbr.rel (!%p27_p9) target bundleno = 9 (0x9), region = 135 }
0x1554   :  { %2460 = vsyncpa [#allocation3], 1 }
0x1555   :  { %2462 = vsyncpa [#allocation3 + $0x1], 1 }

</bundles_post_ra>
